<compile_context>
chip_gen: v5e
topology: v5e:2x2
jax: 0.10.0
libtpu: 0.0.40
codegen_flags: <defaults>
</compile_context>

<pallas_src>
import jax
import jax.numpy as jnp
from jax.experimental import pallas as pl
from jax.experimental.pallas import tpu as pltpu

NUM_ACTIONS = 4
BATCH_SIZE = 501     # module (mis)uses this as the conv channel count; 501*1*1 == fc1 in_features
CHANNELS = BATCH_SIZE
K_PAD = 512          # 501 padded up to a lane-aligned 512
OUT_PAD = 128        # q head padded to one full 128-lane vreg (lane-dense output stores)
C1, C2, FC1 = 32, 64, 512


def _round_up(a, m):
    return (a + m - 1) // m * m


def dqn_kernel(x_ref, w1_ref, b1_ref, w2_ref, b2_ref, w3_ref, b3_ref,
               wf_ref, bf_ref, wq_ref, bq_ref, o_ref):
    f32 = jnp.float32
    h = x_ref[...]
    # conv1 (1x1 conv == channel matmul) + ReLU.  Weights arrive as bf16 (half
    # the DMA bytes); upcast in-register so accumulation stays f32-accurate.
    h = jnp.maximum(jnp.dot(h, w1_ref[...].astype(f32), preferred_element_type=f32) + b1_ref[...], 0.0)
    # conv2 (stride 2 on 1x1 spatial is a no-op) + ReLU
    h = jnp.maximum(jnp.dot(h, w2_ref[...].astype(f32), preferred_element_type=f32) + b2_ref[...], 0.0)
    # conv3 + ReLU (output channels pre-padded 501 -> 512 with zeros)
    h = jnp.maximum(jnp.dot(h, w3_ref[...].astype(f32), preferred_element_type=f32) + b3_ref[...], 0.0)
    # flatten([N, 501, 1, 1]) == [N, 501]; fc1 + ReLU (input dim pre-padded to 512)
    h = jnp.maximum(jnp.dot(h, wf_ref[...].astype(f32), preferred_element_type=f32) + bf_ref[...], 0.0)
    # q head (no activation); padded to 128 lanes so the store is a full unmasked vst
    o_ref[...] = (jnp.dot(h, wq_ref[...].astype(f32), preferred_element_type=f32)
                  + bq_ref[...]).astype(o_ref.dtype)


def _pad_cast_params(params):
    """Zero-pad 501->512 / 4->128 and cast weight matrices to bf16 (biases stay f32)."""
    (w1, b1), (w2, b2), (w3, b3), (wf, bf), (wq, bq) = params
    w1p = jnp.pad(w1, ((0, K_PAD - CHANNELS), (0, 0))).astype(jnp.bfloat16)       # [512, 32]
    w2p = w2.astype(jnp.bfloat16)                                                 # [32, 64]
    w3p = jnp.pad(w3, ((0, 0), (0, K_PAD - CHANNELS))).astype(jnp.bfloat16)       # [64, 512]
    b3p = jnp.pad(b3, ((0, 0), (0, K_PAD - CHANNELS)))                            # [1, 512]
    wfp = jnp.pad(wf, ((0, K_PAD - CHANNELS), (0, 0))).astype(jnp.bfloat16)       # [512, 512]
    wqp = jnp.pad(wq, ((0, 0), (0, OUT_PAD - NUM_ACTIONS))).astype(jnp.bfloat16)  # [512, 128]
    bqp = jnp.pad(bq, ((0, 0), (0, OUT_PAD - NUM_ACTIONS)))                       # [1, 128]
    return (w1p, b1, w2p, b2, w3p, b3p, wfp, bf, wqp, bqp)


def dqn_forward(x, params):
    n = x.shape[0]
    # conv1 has kernel_size=1, stride=4 on a 4x4 input: the only sampled spatial
    # position is (0, 0) -- a trivial static slice instead of a strided slice.
    x2d = x[:, :, 0, 0].astype(jnp.float32)                   # [N, 501]
    x2d = jnp.pad(x2d, ((0, 0), (0, K_PAD - CHANNELS)))       # [N, 512] lane-aligned K

    # Batch tiling: pad N to a sublane multiple; shard large batches across a
    # 1-D parallel grid (uses both v7x TensorCores; no-op on v5e/v6e).
    tile_n = 256 if n > 256 else _round_up(n, 8)
    n_pad = _round_up(n, tile_n)
    x2d = jnp.pad(x2d, ((0, n_pad - n), (0, 0)))
    grid = (n_pad // tile_n,)

    wargs = _pad_cast_params(params)

    # Weights/biases: full-array blocks with a constant index_map, so they are
    # DMA'd once and stay VMEM-resident across grid steps (total <1 MB).
    def _const_spec(a):
        nd = a.ndim
        return pl.BlockSpec(a.shape, lambda i, _nd=nd: (0,) * _nd)

    in_specs = [pl.BlockSpec((tile_n, K_PAD), lambda i: (i, 0))]
    in_specs += [_const_spec(a) for a in wargs]
    out_spec = pl.BlockSpec((tile_n, OUT_PAD), lambda i: (i, 0))

    weight_bytes = sum(a.size * a.dtype.itemsize for a in wargs)
    flops = 2 * n_pad * (K_PAD * C1 + C1 * C2 + C2 * K_PAD + K_PAD * FC1 + FC1 * OUT_PAD)
    bytes_accessed = weight_bytes + x2d.size * 4 + n_pad * OUT_PAD * 4

    out = pl.pallas_call(
        dqn_kernel,
        out_shape=jax.ShapeDtypeStruct((n_pad, OUT_PAD), jnp.float32),
        grid=grid,
        in_specs=in_specs,
        out_specs=out_spec,
        compiler_params=pltpu.CompilerParams(dimension_semantics=("parallel",)),
        cost_estimate=pl.CostEstimate(flops=flops, transcendentals=0,
                                      bytes_accessed=bytes_accessed),
    )(x2d, *wargs)
    # TODO(synk): for repeated small-N calls with fixed params, move weight prep
    # out of the per-call path and/or prefetch weights via a cross-call future.
    return out[:n, :NUM_ACTIONS]


def init_linear(key, fan_in, fan_out):
    # Deterministic PyTorch-style U(-1/sqrt(fan_in), 1/sqrt(fan_in)) init.
    kw, kb = jax.random.split(key)
    bound = 1.0 / float(fan_in) ** 0.5
    w = jax.random.uniform(kw, (fan_in, fan_out), jnp.float32, -bound, bound)  # [in, out]
    b = jax.random.uniform(kb, (1, fan_out), jnp.float32, -bound, bound)       # [1, out]
    return w, b


def reference_forward(x, params):
    (w1, b1), (w2, b2), (w3, b3), (wf, bf), (wq, bq) = params
    h = x[:, :, 0, 0]
    h = jnp.maximum(h @ w1 + b1, 0.0)
    h = jnp.maximum(h @ w2 + b2, 0.0)
    h = jnp.maximum(h @ w3 + b3, 0.0)
    h = jnp.maximum(h @ wf + bf, 0.0)
    return h @ wq + bq


if __name__ == "__main__":
    key = jax.random.PRNGKey(0)
    k_x, k1, k2, k3, k4, k5 = jax.random.split(key, 6)

    # NCHW input, batch N=2, channels=501 (== module's batch_size arg), 4x4 spatial.
    x = jax.random.normal(k_x, (2, BATCH_SIZE, 4, 4), jnp.float32)

    params = (
        init_linear(k1, BATCH_SIZE, C1),     # conv1: 1x1, 501 -> 32
        init_linear(k2, C1, C2),             # conv2: 1x1, 32  -> 64
        init_linear(k3, C2, BATCH_SIZE),     # conv3: 1x1, 64  -> 501
        init_linear(k4, 501, FC1),           # fc1
        init_linear(k5, FC1, NUM_ACTIONS),   # q head
    )

    fwd = jax.jit(dqn_forward)
    out = jax.block_until_ready(fwd(x, params))
    ref = reference_forward(x, params)

    assert out.shape == (2, NUM_ACTIONS)
    assert jnp.allclose(out, ref, atol=2e-2, rtol=2e-2)
    print("KERNEL_OK")
</pallas_src>

<mosaic_0001>
module attributes {stable_mosaic.version = 11 : i64} {
  func.func @dqn_kernel(%arg0: i32, %arg1: memref<8x512xf32, #tpu.memory_space<vmem>>, %arg2: memref<512x32xbf16, #tpu.memory_space<vmem>>, %arg3: memref<1x32xf32, #tpu.memory_space<vmem>>, %arg4: memref<32x64xbf16, #tpu.memory_space<vmem>>, %arg5: memref<1x64xf32, #tpu.memory_space<vmem>>, %arg6: memref<64x512xbf16, #tpu.memory_space<vmem>>, %arg7: memref<1x512xf32, #tpu.memory_space<vmem>>, %arg8: memref<512x512xbf16, #tpu.memory_space<vmem>>, %arg9: memref<1x512xf32, #tpu.memory_space<vmem>>, %arg10: memref<512x128xbf16, #tpu.memory_space<vmem>>, %arg11: memref<1x128xf32, #tpu.memory_space<vmem>>, %arg12: memref<8x128xf32, #tpu.memory_space<vmem>>) attributes {dimension_semantics = [#tpu.dimension_semantics<parallel>], iteration_bounds = array<i64: 1>, scalar_prefetch = 0 : i64, scratch_operands = 0 : i64, tpu.core_type = #tpu.core_type<tc>, window_params = [{transform_indices = @transform_0, window_bounds = array<i64: 8, 512>}, {pipeline_mode = #tpu.pipeline_mode<synchronous>, transform_indices = @transform_1, window_bounds = array<i64: 512, 32>}, {pipeline_mode = #tpu.pipeline_mode<synchronous>, transform_indices = @transform_2, window_bounds = array<i64: 1, 32>}, {pipeline_mode = #tpu.pipeline_mode<synchronous>, transform_indices = @transform_3, window_bounds = array<i64: 32, 64>}, {pipeline_mode = #tpu.pipeline_mode<synchronous>, transform_indices = @transform_4, window_bounds = array<i64: 1, 64>}, {pipeline_mode = #tpu.pipeline_mode<synchronous>, transform_indices = @transform_5, window_bounds = array<i64: 64, 512>}, {pipeline_mode = #tpu.pipeline_mode<synchronous>, transform_indices = @transform_6, window_bounds = array<i64: 1, 512>}, {pipeline_mode = #tpu.pipeline_mode<synchronous>, transform_indices = @transform_7, window_bounds = array<i64: 512, 512>}, {pipeline_mode = #tpu.pipeline_mode<synchronous>, transform_indices = @transform_8, window_bounds = array<i64: 1, 512>}, {pipeline_mode = #tpu.pipeline_mode<synchronous>, transform_indices = @transform_9, window_bounds = array<i64: 512, 128>}, {pipeline_mode = #tpu.pipeline_mode<synchronous>, transform_indices = @transform_10, window_bounds = array<i64: 1, 128>}, {transform_indices = @transform_11, window_bounds = array<i64: 8, 128>}]} {
    %c0 = arith.constant 0 : index
    %c0_0 = arith.constant 0 : index
    %0 = vector.load %arg1[%c0, %c0_0] : memref<8x512xf32, #tpu.memory_space<vmem>>, vector<8x512xf32>
    %c0_1 = arith.constant 0 : index
    %c0_2 = arith.constant 0 : index
    %1 = vector.load %arg2[%c0_1, %c0_2] : memref<512x32xbf16, #tpu.memory_space<vmem>>, vector<512x32xbf16>
    %2 = arith.extf %1 : vector<512x32xbf16> to vector<512x32xf32>
    %cst = arith.constant dense<0.000000e+00> : vector<8x32xf32>
    %3 = tpu.matmul %0, %2, %cst {dimension_numbers = #tpu.dot_dimension_numbers<[1], [0], [0], [1], [0, 0, 1, 1], [], []>} : vector<8x512xf32>, vector<512x32xf32>, vector<8x32xf32> -> vector<8x32xf32>
    %c0_3 = arith.constant 0 : index
    %c0_4 = arith.constant 0 : index
    %4 = vector.load %arg3[%c0_3, %c0_4] : memref<1x32xf32, #tpu.memory_space<vmem>>, vector<1x32xf32>
    %5 = vector.broadcast %4 : vector<1x32xf32> to vector<8x32xf32>
    %6 = arith.addf %3, %5 : vector<8x32xf32>
    %cst_5 = arith.constant 0.000000e+00 : f32
    %7 = vector.broadcast %cst_5 : f32 to vector<8x32xf32>
    %8 = arith.maximumf %6, %7 : vector<8x32xf32>
    %c0_6 = arith.constant 0 : index
    %c0_7 = arith.constant 0 : index
    %9 = vector.load %arg4[%c0_6, %c0_7] : memref<32x64xbf16, #tpu.memory_space<vmem>>, vector<32x64xbf16>
    %10 = arith.extf %9 : vector<32x64xbf16> to vector<32x64xf32>
    %cst_8 = arith.constant dense<0.000000e+00> : vector<8x64xf32>
    %11 = tpu.matmul %8, %10, %cst_8 {dimension_numbers = #tpu.dot_dimension_numbers<[1], [0], [0], [1], [0, 0, 1, 1], [], []>} : vector<8x32xf32>, vector<32x64xf32>, vector<8x64xf32> -> vector<8x64xf32>
    %c0_9 = arith.constant 0 : index
    %c0_10 = arith.constant 0 : index
    %12 = vector.load %arg5[%c0_9, %c0_10] : memref<1x64xf32, #tpu.memory_space<vmem>>, vector<1x64xf32>
    %13 = vector.broadcast %12 : vector<1x64xf32> to vector<8x64xf32>
    %14 = arith.addf %11, %13 : vector<8x64xf32>
    %cst_11 = arith.constant 0.000000e+00 : f32
    %15 = vector.broadcast %cst_11 : f32 to vector<8x64xf32>
    %16 = arith.maximumf %14, %15 : vector<8x64xf32>
    %c0_12 = arith.constant 0 : index
    %c0_13 = arith.constant 0 : index
    %17 = vector.load %arg6[%c0_12, %c0_13] : memref<64x512xbf16, #tpu.memory_space<vmem>>, vector<64x512xbf16>
    %18 = arith.extf %17 : vector<64x512xbf16> to vector<64x512xf32>
    %cst_14 = arith.constant dense<0.000000e+00> : vector<8x512xf32>
    %19 = tpu.matmul %16, %18, %cst_14 {dimension_numbers = #tpu.dot_dimension_numbers<[1], [0], [0], [1], [0, 0, 1, 1], [], []>} : vector<8x64xf32>, vector<64x512xf32>, vector<8x512xf32> -> vector<8x512xf32>
    %c0_15 = arith.constant 0 : index
    %c0_16 = arith.constant 0 : index
    %20 = vector.load %arg7[%c0_15, %c0_16] : memref<1x512xf32, #tpu.memory_space<vmem>>, vector<1x512xf32>
    %21 = vector.broadcast %20 : vector<1x512xf32> to vector<8x512xf32>
    %22 = arith.addf %19, %21 : vector<8x512xf32>
    %cst_17 = arith.constant 0.000000e+00 : f32
    %23 = vector.broadcast %cst_17 : f32 to vector<8x512xf32>
    %24 = arith.maximumf %22, %23 : vector<8x512xf32>
    %c0_18 = arith.constant 0 : index
    %c0_19 = arith.constant 0 : index
    %25 = vector.load %arg8[%c0_18, %c0_19] : memref<512x512xbf16, #tpu.memory_space<vmem>>, vector<512x512xbf16>
    %26 = arith.extf %25 : vector<512x512xbf16> to vector<512x512xf32>
    %cst_20 = arith.constant dense<0.000000e+00> : vector<8x512xf32>
    %27 = tpu.matmul %24, %26, %cst_20 {dimension_numbers = #tpu.dot_dimension_numbers<[1], [0], [0], [1], [0, 0, 1, 1], [], []>} : vector<8x512xf32>, vector<512x512xf32>, vector<8x512xf32> -> vector<8x512xf32>
    %c0_21 = arith.constant 0 : index
    %c0_22 = arith.constant 0 : index
    %28 = vector.load %arg9[%c0_21, %c0_22] : memref<1x512xf32, #tpu.memory_space<vmem>>, vector<1x512xf32>
    %29 = vector.broadcast %28 : vector<1x512xf32> to vector<8x512xf32>
    %30 = arith.addf %27, %29 : vector<8x512xf32>
    %cst_23 = arith.constant 0.000000e+00 : f32
    %31 = vector.broadcast %cst_23 : f32 to vector<8x512xf32>
    %32 = arith.maximumf %30, %31 : vector<8x512xf32>
    %c0_24 = arith.constant 0 : index
    %c0_25 = arith.constant 0 : index
    %33 = vector.load %arg10[%c0_24, %c0_25] : memref<512x128xbf16, #tpu.memory_space<vmem>>, vector<512x128xbf16>
    %34 = arith.extf %33 : vector<512x128xbf16> to vector<512x128xf32>
    %cst_26 = arith.constant dense<0.000000e+00> : vector<8x128xf32>
    %35 = tpu.matmul %32, %34, %cst_26 {dimension_numbers = #tpu.dot_dimension_numbers<[1], [0], [0], [1], [0, 0, 1, 1], [], []>} : vector<8x512xf32>, vector<512x128xf32>, vector<8x128xf32> -> vector<8x128xf32>
    %c0_27 = arith.constant 0 : index
    %c0_28 = arith.constant 0 : index
    %36 = vector.load %arg11[%c0_27, %c0_28] : memref<1x128xf32, #tpu.memory_space<vmem>>, vector<1x128xf32>
    %37 = vector.broadcast %36 : vector<1x128xf32> to vector<8x128xf32>
    %38 = arith.addf %35, %37 : vector<8x128xf32>
    %c0_29 = arith.constant 0 : index
    %c0_30 = arith.constant 0 : index
    %39 = vector.load %arg12[%c0_29, %c0_30] : memref<8x128xf32, #tpu.memory_space<vmem>>, vector<8x128xf32>
    tpu.vector_store %arg12[%c0_29, %c0_30], %38 {strides = array<i32>} : memref<8x128xf32, #tpu.memory_space<vmem>>, vector<8x128xf32>,
    return
  }
  func.func @transform_0(%arg0: i32) -> (i32, i32) {
    %c0_i32 = arith.constant 0 : i32
    %c0_i32_0 = arith.constant 0 : i32
    return %arg0, %c0_i32 : i32, i32
  }
  func.func @transform_1(%arg0: i32) -> (i32, i32) {
    %c0_i32 = arith.constant 0 : i32
    %c0_i32_0 = arith.constant 0 : i32
    %c0_i32_1 = arith.constant 0 : i32
    return %c0_i32, %c0_i32_0 : i32, i32
  }
  func.func @transform_2(%arg0: i32) -> (i32, i32) {
    %c0_i32 = arith.constant 0 : i32
    %c0_i32_0 = arith.constant 0 : i32
    %c0_i32_1 = arith.constant 0 : i32
    return %c0_i32, %c0_i32_0 : i32, i32
  }
  func.func @transform_3(%arg0: i32) -> (i32, i32) {
    %c0_i32 = arith.constant 0 : i32
    %c0_i32_0 = arith.constant 0 : i32
    %c0_i32_1 = arith.constant 0 : i32
    return %c0_i32, %c0_i32_0 : i32, i32
  }
  func.func @transform_4(%arg0: i32) -> (i32, i32) {
    %c0_i32 = arith.constant 0 : i32
    %c0_i32_0 = arith.constant 0 : i32
    %c0_i32_1 = arith.constant 0 : i32
    return %c0_i32, %c0_i32_0 : i32, i32
  }
  func.func @transform_5(%arg0: i32) -> (i32, i32) {
    %c0_i32 = arith.constant 0 : i32
    %c0_i32_0 = arith.constant 0 : i32
    %c0_i32_1 = arith.constant 0 : i32
    return %c0_i32, %c0_i32_0 : i32, i32
  }
  func.func @transform_6(%arg0: i32) -> (i32, i32) {
    %c0_i32 = arith.constant 0 : i32
    %c0_i32_0 = arith.constant 0 : i32
    %c0_i32_1 = arith.constant 0 : i32
    return %c0_i32, %c0_i32_0 : i32, i32
  }
  func.func @transform_7(%arg0: i32) -> (i32, i32) {
    %c0_i32 = arith.constant 0 : i32
    %c0_i32_0 = arith.constant 0 : i32
    %c0_i32_1 = arith.constant 0 : i32
    return %c0_i32, %c0_i32_0 : i32, i32
  }
  func.func @transform_8(%arg0: i32) -> (i32, i32) {
    %c0_i32 = arith.constant 0 : i32
    %c0_i32_0 = arith.constant 0 : i32
    %c0_i32_1 = arith.constant 0 : i32
    return %c0_i32, %c0_i32_0 : i32, i32
  }
  func.func @transform_9(%arg0: i32) -> (i32, i32) {
    %c0_i32 = arith.constant 0 : i32
    %c0_i32_0 = arith.constant 0 : i32
    %c0_i32_1 = arith.constant 0 : i32
    return %c0_i32, %c0_i32_0 : i32, i32
  }
  func.func @transform_10(%arg0: i32) -> (i32, i32) {
    %c0_i32 = arith.constant 0 : i32
    %c0_i32_0 = arith.constant 0 : i32
    %c0_i32_1 = arith.constant 0 : i32
    return %c0_i32, %c0_i32_0 : i32, i32
  }
  func.func @transform_11(%arg0: i32) -> (i32, i32) {
    %c0_i32 = arith.constant 0 : i32
    %c0_i32_0 = arith.constant 0 : i32
    return %arg0, %c0_i32 : i32, i32
  }
}

</mosaic_0001>

<bundles_post_ra>
// kernel: dqn_forward.1
= control target key start
LH: loop header
LB: loop body
LE: loop exit
PB: predicated region body
PF: predicated region fallthrough
CT: control target
= control target key end

     0   :  { %vm267_vm0 = vcmask 261120   ;;  %vm350_vm1 = vcmask 523264   ;;  %s2974_s1 = inlined_call_operand.vmem [shape: bf16[512,32], index: 1, kind: input, shape index: {}]   ;;  %s2975_s2 = inlined_call_operand.vmem [shape: f32[1,32], index: 2, kind: input, shape index: {}]   ;;  %s2976_s0 = inlined_call_operand.vmem [shape: f32[8,512], index: 0, kind: input, shape index: {}]   ;;  %s2977_s4 = inlined_call_operand.vmem [shape: f32[1,64], index: 4, kind: input, shape index: {}]   ;;  %s2978_s3 = inlined_call_operand.vmem [shape: bf16[32,64], index: 3, kind: input, shape index: {}]   ;;  %s2979_s5 = inlined_call_operand.vmem [shape: bf16[64,512], index: 5, kind: input, shape index: {}]   ;;  %s2980_s7 = inlined_call_operand.vmem [shape: bf16[512,512], index: 7, kind: input, shape index: {}]   ;;  %s2981_s6 = inlined_call_operand.vmem [shape: f32[1,512], index: 6, kind: input, shape index: {}]   ;;  %s2982_s9 = inlined_call_operand.vmem [shape: bf16[512,128], index: 9, kind: input, shape index: {}]   ;;  %s2983_s10 = inlined_call_operand.vmem [shape: f32[1,128], index: 10, kind: input, shape index: {}]   ;;  %s2984_s8 = inlined_call_operand.vmem [shape: f32[1,512], index: 8, kind: input, shape index: {}]   ;;  %s2985_s11 = inlined_call_operand.vmem [shape: f32[8,128], index: 11, kind: output, shape index: {}]  }
   0x1   :  { %v1664_v0 = vld [vmem:[%s2974_s1 + $0xb8] sm:$0xff]   ;;  %v1663_v8 = vld [vmem:[%s2974_s1 + $0xb0] sm:$0xff]   ;;  %v1662_v20 = vld [vmem:[%s2974_s1 + $0xa8] sm:$0xff]  }
   0x2   :  { %v1648_v1 = vld [vmem:[%s2974_s1 + $0x38] sm:$0xff]   ;;  %v1473_v3 = vunpack.c.h.bf16 %v1664_v0  ;;  %v1472_v5 = vunpack.c.l.bf16 %v1664_v0  ;;  %v1647_v9 = vld [vmem:[%s2974_s1 + $0x30] sm:$0xff]   ;;  %v1469_v15 = vunpack.c.h.bf16 %v1663_v8  ;;  %v1646_v21 = vld [vmem:[%s2974_s1 + $0x28] sm:$0xff]   ;;  %v1468_v22 = vunpack.c.l.bf16 %v1663_v8 }
   0x3   :  { %v1672_v2 = vld [vmem:[%s2974_s1 + $0xf8] sm:$0xff]   ;;  %v1409_v4 = vunpack.c.h.bf16 %v1648_v1  ;;  %v1408_v10 = vunpack.c.l.bf16 %v1648_v1  ;;  %v1671_v13 = vld [vmem:[%s2974_s1 + $0xf0] sm:$0xff]   ;;  %v1405_v16 = vunpack.c.h.bf16 %v1647_v9  ;;  %v1404_v23 = vunpack.c.l.bf16 %v1647_v9  ;;  %v1670_v24 = vld [vmem:[%s2974_s1 + $0xe8] sm:$0xff]  }
   0x4   :  { %v1505_v6 = vunpack.c.h.bf16 %v1672_v2  ;;  %v1656_v7 = vld [vmem:[%s2974_s1 + $0x78] sm:$0xff]   ;;  %v1504_v12 = vunpack.c.l.bf16 %v1672_v2  ;;  %v1655_v14 = vld [vmem:[%s2974_s1 + $0x70] sm:$0xff]   ;;  %214 = vmatpush.msra.mxu2 %v1473_v3  ;;  %v1501_v18 = vunpack.c.h.bf16 %v1671_v13  ;;  %v1654_v25 = vld [vmem:[%s2974_s1 + $0x68] sm:$0xff]   ;;  %v1500_v26 = vunpack.c.l.bf16 %v1671_v13 }
   0x5   :  { %v1441_v11 = vunpack.c.h.bf16 %v1656_v7  ;;  %174 = vmatpush.msra.mxu0 %v1409_v4  ;;  %v1440_v17 = vunpack.c.l.bf16 %v1656_v7  ;;  %v1437_v19 = vunpack.c.h.bf16 %v1655_v14  ;;  %v1436_v27 = vunpack.c.l.bf16 %v1655_v14  ;;  %v1661_v32 = vld [vmem:[%s2974_s1 + $0xa0] sm:$0xff]   ;;  %v1660_v44 = vld [vmem:[%s2974_s1 + $0x98] sm:$0xff]   ;;  %v1659_v56 = vld [vmem:[%s2974_s1 + $0x90] sm:$0xff]  }
   0x6   :  { %234 = vmatpush.msra.mxu3 %v1505_v6  ;;  %215 = vmatpush.msra.mxu2 %v1472_v5  ;;  %v1465_v28 = vunpack.c.h.bf16 %v1662_v20  ;;  %v1401_v29 = vunpack.c.h.bf16 %v1646_v21  ;;  %v1497_v30 = vunpack.c.h.bf16 %v1670_v24  ;;  %v1433_v31 = vunpack.c.h.bf16 %v1654_v25  ;;  %v1645_v33 = vld [vmem:[%s2974_s1 + $0x20] sm:$0xff]   ;;  %v1644_v45 = vld [vmem:[%s2974_s1 + $0x18] sm:$0xff]   ;;  %v1643_v57 = vld [vmem:[%s2974_s1 + $0x10] sm:$0xff]  }
   0x7   :  { %194 = vmatpush.msra.mxu1 %v1441_v11  ;;  %175 = vmatpush.msra.mxu0 %v1408_v10  ;;  %v1464_v34 = vunpack.c.l.bf16 %v1662_v20  ;;  %v1400_v35 = vunpack.c.l.bf16 %v1646_v21  ;;  %v1669_v36 = vld [vmem:[%s2974_s1 + $0xe0] sm:$0xff]   ;;  %v1496_v38 = vunpack.c.l.bf16 %v1670_v24  ;;  %v1432_v39 = vunpack.c.l.bf16 %v1654_v25  ;;  %v1668_v48 = vld [vmem:[%s2974_s1 + $0xd8] sm:$0xff]   ;;  %v1667_v60 = vld [vmem:[%s2974_s1 + $0xd0] sm:$0xff]  }
   0x8   :  { %235 = vmatpush.msra.mxu3 %v1504_v12  ;;  %216 = vmatpush.msra.mxu2 %v1469_v15  ;;  %v1653_v37 = vld [vmem:[%s2974_s1 + $0x60] sm:$0xff]   ;;  %v1461_v40 = vunpack.c.h.bf16 %v1661_v32  ;;  %v1397_v41 = vunpack.c.h.bf16 %v1645_v33  ;;  %v1493_v42 = vunpack.c.h.bf16 %v1669_v36  ;;  %v1460_v46 = vunpack.c.l.bf16 %v1661_v32  ;;  %v1652_v49 = vld [vmem:[%s2974_s1 + $0x58] sm:$0xff]   ;;  %v1651_v61 = vld [vmem:[%s2974_s1 + $0x50] sm:$0xff]  }
   0x9   :  { %195 = vmatpush.msra.mxu1 %v1440_v17  ;;  %176 = vmatpush.msra.mxu0 %v1405_v16  ;;  %v1429_v43 = vunpack.c.h.bf16 %v1653_v37  ;;  %v1396_v47 = vunpack.c.l.bf16 %v1645_v33  ;;  %v1492_v50 = vunpack.c.l.bf16 %v1669_v36  ;;  %v1428_v51 = vunpack.c.l.bf16 %v1653_v37  ;;  %v1658_v4 = vld [vmem:[%s2974_s1 + $0x88] sm:$0xff]   ;;  %v1657_v16 = vld [vmem:[%s2974_s1 + $0x80] sm:$0xff]   ;;  %v41_v33 = vld [vmem:[%s2976_s0 + $0x18] sm:$0xff] }
   0xa   :  { %236 = vmatpush.msra.mxu3 %v1501_v18  ;;  %217 = vmatpush.msra.mxu2 %v1468_v22  ;;  %v1457_v52 = vunpack.c.h.bf16 %v1660_v44  ;;  %v1393_v53 = vunpack.c.h.bf16 %v1644_v45  ;;  %v1489_v54 = vunpack.c.h.bf16 %v1668_v48  ;;  %v1425_v55 = vunpack.c.h.bf16 %v1652_v49  ;;  %v1642_v5 = vld [vmem:[%s2974_s1 + $0x8] sm:$0xff]   ;;  %v1379_v17 = vld [vmem:[%s2974_s1] sm:$0xff]  }
   0xb   :  { %196 = vmatpush.msra.mxu1 %v1437_v19  ;;  %177 = vmatpush.msra.mxu0 %v1404_v23  ;;  %v1456_v58 = vunpack.c.l.bf16 %v1660_v44  ;;  %v1392_v59 = vunpack.c.l.bf16 %v1644_v45  ;;  %v1488_v62 = vunpack.c.l.bf16 %v1668_v48  ;;  %v1424_v63 = vunpack.c.l.bf16 %v1652_v49  ;;  %v1666_v8 = vld [vmem:[%s2974_s1 + $0xc8] sm:$0xff]   ;;  %v1665_v20 = vld [vmem:[%s2974_s1 + $0xc0] sm:$0xff]  }
   0xc   :  { %237 = vmatpush.msra.mxu3 %v1500_v26  ;;  %218 = vmatpush.msra.mxu2 %v1465_v28  ;;  %v1453_v0 = vunpack.c.h.bf16 %v1659_v56  ;;  %v1389_v1 = vunpack.c.h.bf16 %v1643_v57  ;;  %v1485_v2 = vunpack.c.h.bf16 %v1667_v60  ;;  %v1421_v3 = vunpack.c.h.bf16 %v1651_v61  ;;  %v1650_v9 = vld [vmem:[%s2974_s1 + $0x48] sm:$0xff]   ;;  %v1649_v21 = vld [vmem:[%s2974_s1 + $0x40] sm:$0xff]  }
   0xd   :  { %197 = vmatpush.msra.mxu1 %v1436_v27  ;;  %178 = vmatpush.msra.mxu0 %v1401_v29  ;;  %v1452_v6 = vunpack.c.l.bf16 %v1659_v56  ;;  %v1388_v7 = vunpack.c.l.bf16 %v1643_v57  ;;  %v1484_v10 = vunpack.c.l.bf16 %v1667_v60  ;;  %v1420_v11 = vunpack.c.l.bf16 %v1651_v61  ;;  %v38_v32 = vld [vmem:[%s2976_s0] sm:$0xff]  ;;  %v1673_v36 = vld [vmem:[%s2978_s3 + $0x8] sm:$0xff]  }
   0xe   :  { %238 = vmatpush.msra.mxu3 %v1497_v30  ;;  %219 = vmatpush.msra.mxu2 %v1464_v34  ;;  %v1449_v12 = vunpack.c.h.bf16 %v1658_v4  ;;  %v1385_v13 = vunpack.c.h.bf16 %v1642_v5  ;;  %v1481_v14 = vunpack.c.h.bf16 %v1666_v8  ;;  %v1417_v15 = vunpack.c.h.bf16 %v1650_v9  ;;  %v304_v44 = vld [vmem:[%s2979_s5 + $0x60] sm:$0xff]  ;;  %v305_v49 = vld [vmem:[%s2979_s5 + $0x68] sm:$0xff] }
   0xf   :  { %198 = vmatpush.msra.mxu1 %v1433_v31  ;;  %179 = vmatpush.msra.mxu0 %v1400_v35  ;;  %v1448_v18 = vunpack.c.l.bf16 %v1658_v4  ;;  %v1384_v19 = vunpack.c.l.bf16 %v1642_v5  ;;  %v1480_v22 = vunpack.c.l.bf16 %v1666_v8  ;;  %v1416_v23 = vunpack.c.l.bf16 %v1650_v9  ;;  %v40_v31 = vld [vmem:[%s2976_s0 + $0x10] sm:$0xff]  ;;  %v39_v35 = vld [vmem:[%s2976_s0 + $0x8] sm:$0xff]  ;;  %v300_v56 = vld [vmem:[%s2979_s5 + $0x40] sm:$0xff] }
  0x10   :  { %239 = vmatpush.msra.mxu3 %v1496_v38  ;;  %220 = vmatpush.msra.mxu2 %v1461_v40  ;;  %v1445_v24 = vunpack.c.h.bf16 %v1657_v16  ;;  %v1381_v25 = vunpack.c.h.bf16 %v1379_v17  ;;  %v1477_v26 = vunpack.c.h.bf16 %v1665_v20  ;;  %v1413_v27 = vunpack.c.h.bf16 %v1649_v21  ;;  %v1705_v8 = vld [vmem:[%s2975_s2] ss:$0 sm:$0xff] }
  0x11   :  { %199 = vmatpush.msra.mxu1 %v1432_v39  ;;  %180 = vmatpush.msra.mxu0 %v1397_v41  ;;  %v1444_v28 = vunpack.c.l.bf16 %v1657_v16  ;;  %v1380_v29 = vunpack.c.l.bf16 %v1379_v17  ;;  %v1476_v30 = vunpack.c.l.bf16 %v1665_v20  ;;  %v1412_v34 = vunpack.c.l.bf16 %v1649_v21  ;;  %v1507_v39 = vld [vmem:[%s2978_s3] sm:$0xff]  }
  0x12   :  { %240 = vmatpush.msra.mxu3 %v1493_v42  ;;  %221 = vmatpush.msra.mxu2 %v1460_v46  ;;  %v1513_v37 = vunpack.c.h.bf16 %v1673_v36  ;;  %v1512_v38 = vunpack.c.l.bf16 %v1673_v36  ;;  %v1509_v40 = vunpack.c.h.bf16 %v1507_v39  ;;  %v1508_v41 = vunpack.c.l.bf16 %v1507_v39  ;;  %v306_v42 = vld [vmem:[%s2979_s5 + $0x70] sm:$0xff] }
  0x13   :  { %200 = vmatpush.msra.mxu1 %v1429_v43  ;;  %181 = vmatpush.msra.mxu0 %v1396_v47  ;;  %v307_v43 = vld [vmem:[%s2979_s5 + $0x78] sm:$0xff]  ;;  %v336_v45 = vunpack.c.l.bf16 %v306_v42  ;;  %v337_v46 = vunpack.c.h.bf16 %v306_v42  ;;  %v1936_v36 = vld [vmem:[%s2980_s7 + $0xf0] sm:$0xff]  ;;  %v1954_v42 = vld [vmem:[%s2980_s7 + $0x3e0] sm:$0xff] }
  0x14   :  { %241 = vmatpush.msra.mxu3 %v1492_v50  ;;  %222 = vmatpush.msra.mxu2 %v1457_v52  ;;  %v338_v47 = vunpack.c.l.bf16 %v307_v43  ;;  %v339_v48 = vunpack.c.h.bf16 %v307_v43  ;;  %v302_v50 = vld [vmem:[%s2979_s5 + $0x50] sm:$0xff]  ;;  %v332_v52 = vunpack.c.l.bf16 %v304_v44  ;;  %v626_v39 = vunpack.c.l.bf16 %v1936_v36 }
  0x15   :  { %201 = vmatpush.msra.mxu1 %v1428_v51  ;;  %182 = vmatpush.msra.mxu0 %v1393_v53  ;;  %v303_v51 = vld [vmem:[%s2979_s5 + $0x58] sm:$0xff]  ;;  %v333_v53 = vunpack.c.h.bf16 %v304_v44  ;;  %v328_v57 = vunpack.c.l.bf16 %v302_v50  ;;  %v1959_v43 = vld [vmem:[%s2980_s7 + $0xd0] sm:$0xff] }
  0x16   :  { %242 = vmatpush.msra.mxu3 %v1489_v54  ;;  %223 = vmatpush.msra.mxu2 %v1456_v58  ;;  %v334_v54 = vunpack.c.l.bf16 %v305_v49  ;;  %v329_v58 = vunpack.c.h.bf16 %v302_v50  ;;  %v330_v60 = vunpack.c.l.bf16 %v303_v51  ;;  %v331_v61 = vunpack.c.h.bf16 %v303_v51  ;;  %v1964_v44 = vld [vmem:[%s2980_s7 + $0x3d0] sm:$0xff] }
  0x17   :  { %202 = vmatpush.msra.mxu1 %v1425_v55  ;;  %183 = vmatpush.msra.mxu0 %v1392_v59  ;;  %v335_v55 = vunpack.c.h.bf16 %v305_v49  ;;  %v301_v59 = vld [vmem:[%s2979_s5 + $0x48] sm:$0xff]  ;;  %v618_v49 = vunpack.c.l.bf16 %v1959_v43  ;;  %v810_v50 = vunpack.c.l.bf16 %v1964_v44 }
  0x18   :  { %243 = vmatpush.msra.mxu3 %v1488_v62  ;;  %224 = vmatpush.msra.mxu2 %v1453_v0  ;;  %v298_v62 = vld [vmem:[%s2979_s5 + $0x30] sm:$0xff]  ;;  %v325_v0 = vunpack.c.h.bf16 %v300_v56 }
  0x19   :  { %203 = vmatpush.msra.mxu1 %v1424_v63  ;;  %184 = vmatpush.msra.mxu0 %v1389_v1  ;;  %v324_v63 = vunpack.c.l.bf16 %v300_v56  ;;  %v299_v1 = vld [vmem:[%s2979_s5 + $0x38] sm:$0xff]  ;;  %v320_v4 = vunpack.c.l.bf16 %v298_v62  ;;  %v321_v5 = vunpack.c.h.bf16 %v298_v62  ;;  %v2018_v62 = vld [vmem:[%s2980_s7 + $0xa0] sm:$0xff] }
  0x1a   :  { %244 = vmatpush.msra.mxu3 %v1485_v2  ;;  %225 = vmatpush.msra.mxu2 %v1452_v6  ;;  %v326_v2 = vunpack.c.l.bf16 %v301_v59  ;;  %v322_v6 = vunpack.c.l.bf16 %v299_v1 }
  0x1b   :  { %204 = vmatpush.msra.mxu1 %v1421_v3  ;;  %185 = vmatpush.msra.mxu0 %v1388_v7  ;;  %v327_v3 = vunpack.c.h.bf16 %v301_v59  ;;  %v323_v7 = vunpack.c.h.bf16 %v299_v1 }
  0x1c   :  { %245 = vmatpush.msra.mxu3 %v1484_v10  ;;  %226 = vmatpush.msra.mxu2 %v1449_v12 }
  0x1d   :  { %205 = vmatpush.msra.mxu1 %v1420_v11  ;;  %186 = vmatpush.msra.mxu0 %v1385_v13 }
  0x1e   :  { %246 = vmatpush.msra.mxu3 %v1481_v14  ;;  %227 = vmatpush.msra.mxu2 %v1448_v18  ;;  %v296_v18 = vld [vmem:[%s2979_s5 + $0x20] sm:$0xff] }
  0x1f   :  { %206 = vmatpush.msra.mxu1 %v1417_v15  ;;  %187 = vmatpush.msra.mxu0 %v1384_v19  ;;  %v297_v19 = vld [vmem:[%s2979_s5 + $0x28] sm:$0xff]  ;;  %v316_v20 = vunpack.c.l.bf16 %v296_v18  ;;  %v317_v21 = vunpack.c.h.bf16 %v296_v18  ;;  %v2086_v18 = vld [vmem:[%s2980_s7 + $0x80] sm:$0xff] }
  0x20   :  { %247 = vmatpush.msra.mxu3 %v1480_v22  ;;  %228 = vmatpush.msra.mxu2 %v1445_v24  ;;  %v318_v22 = vunpack.c.l.bf16 %v297_v19  ;;  %v294_v24 = vld [vmem:[%s2979_s5 + $0x10] sm:$0xff] }
  0x21   :  { %207 = vmatpush.msra.mxu1 %v1416_v23  ;;  %188 = vmatpush.msra.mxu0 %v1381_v25  ;;  %v319_v23 = vunpack.c.h.bf16 %v297_v19  ;;  %v295_v25 = vld [vmem:[%s2979_s5 + $0x18] sm:$0xff] }
  0x22   :  { %248 = vmatpush.msra.mxu3 %v1477_v26  ;;  %229 = vmatpush.msra.mxu2 %v1444_v28  ;;  %v312_v26 = vunpack.c.l.bf16 %v294_v24  ;;  %v314_v28 = vunpack.c.l.bf16 %v295_v25 }
  0x23   :  { %208 = vmatpush.msra.mxu1 %v1413_v27  ;;  %189 = vmatpush.msra.mxu0 %v1380_v29  ;;  %v313_v27 = vunpack.c.h.bf16 %v294_v24  ;;  %v315_v29 = vunpack.c.h.bf16 %v295_v25  ;;  %v2100_v24 = vld [vmem:[%s2980_s7 + $0x190] sm:$0xff] }
  0x24   :  { %230 = vmatmul.f32.vlgmr.msra.gmra.mxu2 %v40_v31  ;;  %249 = vmatpush.msra.mxu3 %v1476_v30  ;;  %v292_v30 = vld [vmem:[%s2979_s5] sm:$0xff]  ;;  %v293_v31 = vld [vmem:[%s2979_s5 + $0x8] sm:$0xff]  ;;  %v2105_v25 = vld [vmem:[%s2980_s7 + $0x290] sm:$0xff] }
  0x25   :  { %190 = vmatmul.f32.vlgmr.msra.gmra.mxu0 %v38_v32  ;;  %250 = vmatmul.f32.vlgmr.msra.gmra.mxu3 %v41_v33  ;;  %v308_v32 = vunpack.c.l.bf16 %v292_v30  ;;  %v309_v33 = vunpack.c.h.bf16 %v292_v30  ;;  %v598_v30 = vunpack.c.l.bf16 %v2086_v18 }
  0x26   :  { %209 = vmatpush.msra.mxu1 %v1412_v34  ;;  %283 = vmatpush.msrb.mxu0 %v1513_v37  ;;  %v310_v34 = vunpack.c.l.bf16 %v293_v31  ;;  %v1941_v37 = vld [vmem:[%s2980_s7 + $0x3f0] sm:$0xff] }
  0x27   :  { %210 = vmatmul.f32.vlgmr.msra.gmra.mxu1 %v39_v35  ;;  %382 = vmatpush.msrb.mxu2 %v337_v46  ;;  %v311_v35 = vunpack.c.h.bf16 %v293_v31  ;;  %v1970_v46 = vld [vmem:[%s2980_s7 + $0xc0] sm:$0xff] }
  0x28   :  { %284 = vmatpush.msrb.mxu0 %v1512_v38  ;;  %362 = vmatpush.msrb.mxu1 %v336_v45  ;;  %v1946_v38 = vld [vmem:[%s2980_s7 + $0xe0] sm:$0xff]  ;;  %v814_v45 = vunpack.c.l.bf16 %v1954_v42  ;;  %v614_v59 = vunpack.c.l.bf16 %v1970_v46 }
  0x29   :  { %402 = vmatpush.msrb.mxu3 %v338_v47  ;;  %383 = vmatpush.msrb.mxu2 %v333_v53  ;;  %v1975_v47 = vld [vmem:[%s2980_s7 + $0x1f0] sm:$0xff]  ;;  %v1989_v53 = vld [vmem:[%s2980_s7 + $0x3c0] sm:$0xff] }
  0x2a   :  { %285 = vmatpush.msrb.mxu0 %v1509_v40  ;;  %363 = vmatpush.msrb.mxu1 %v332_v52  ;;  %v818_v40 = vunpack.c.l.bf16 %v1941_v37  ;;  %v690_v51 = vunpack.c.l.bf16 %v1975_v47 }
  0x2b   :  { %403 = vmatpush.msrb.mxu3 %v334_v54  ;;  %384 = vmatpush.msrb.mxu2 %v329_v58  ;;  %v1994_v54 = vld [vmem:[%s2980_s7 + $0x1e0] sm:$0xff]  ;;  %v2010_v58 = vld [vmem:[%s2980_s7 + $0x3b0] sm:$0xff] }
  0x2c   :  { %286 = vmatpush.msrb.mxu0 %v1508_v41  ;;  %364 = vmatpush.msrb.mxu1 %v328_v57  ;;  %v622_v41 = vunpack.c.l.bf16 %v1946_v38  ;;  %v686_v56 = vunpack.c.l.bf16 %v1994_v54  ;;  %v2005_v57 = vld [vmem:[%s2980_s7 + $0x2e0] sm:$0xff] }
  0x2d   :  { %404 = vmatpush.msrb.mxu3 %v330_v60  ;;  %385 = vmatpush.msrb.mxu2 %v325_v0  ;;  %v806_v60 = vunpack.c.l.bf16 %v1989_v53  ;;  %v2028_v0 = vld [vmem:[%s2980_s7 + $0x2d0] sm:$0xff] }
  0x2e   :  { %422 = vmatpush.msra.mxu0 %v339_v48  ;;  %365 = vmatpush.msrb.mxu1 %v324_v63  ;;  %v1980_v48 = vld [vmem:[%s2980_s7 + $0x2f0] sm:$0xff] }
  0x2f   :  { %405 = vmatpush.msrb.mxu3 %v326_v2  ;;  %386 = vmatpush.msrb.mxu2 %v321_v5  ;;  %v754_v52 = vunpack.c.l.bf16 %v1980_v48  ;;  %v2023_v63 = vld [vmem:[%s2980_s7 + $0x1d0] sm:$0xff]  ;;  %v746_v2 = vunpack.c.l.bf16 %v2028_v0  ;;  %v2045_v5 = vld [vmem:[%s2980_s7 + $0x2c0] sm:$0xff] }
  0x30   :  { %423 = vmatpush.msra.mxu0 %v335_v55  ;;  %366 = vmatpush.msrb.mxu1 %v320_v4  ;;  %v1999_v55 = vld [vmem:[%s2980_s7 + $0xb0] sm:$0xff]  ;;  %v682_v1 = vunpack.c.l.bf16 %v2023_v63  ;;  %v2040_v4 = vld [vmem:[%s2980_s7 + $0x1c0] sm:$0xff] }
  0x31   :  { %406 = vmatpush.msrb.mxu3 %v322_v6  ;;  %387 = vmatpush.msrb.mxu2 %v317_v21  ;;  %v610_v6 = vunpack.c.l.bf16 %v1999_v55  ;;  %v2093_v21 = vld [vmem:[%s2980_s7 + $0x380] sm:$0xff] }
  0x32   :  { %424 = vmatpush.msra.mxu0 %v331_v61  ;;  %367 = vmatpush.msrb.mxu1 %v316_v20  ;;  %v750_v61 = vunpack.c.l.bf16 %v2005_v57  ;;  %v790_v31 = vunpack.c.l.bf16 %v2093_v21 }
  0x33   :  { %407 = vmatpush.msrb.mxu3 %v318_v22  ;;  %388 = vmatpush.msrb.mxu2 %v313_v27 }
  0x34   :  { %425 = vmatpush.msra.mxu0 %v327_v3  ;;  %368 = vmatpush.msrb.mxu1 %v312_v26  ;;  %v2035_v3 = vld [vmem:[%s2980_s7 + $0x3a0] sm:$0xff]  ;;  %v2110_v26 = vld [vmem:[%s2980_s7 + $0x70] sm:$0xff] }
  0x35   :  { %408 = vmatpush.msrb.mxu3 %v314_v28  ;;  %389 = vmatpush.msrb.mxu2 %v309_v33  ;;  %v2129_v33 = vld [vmem:[%s2980_s7 + $0x280] sm:$0xff] }
  0x36   :  { %426 = vmatpush.msra.mxu0 %v323_v7  ;;  %369 = vmatpush.msrb.mxu1 %v308_v32  ;;  %v802_v7 = vunpack.c.l.bf16 %v2010_v58  ;;  %v2124_v32 = vld [vmem:[%s2980_s7 + $0x180] sm:$0xff] }
  0x37   :  { %409 = vmatpush.msrb.mxu3 %v310_v34  ;;  %852 = vmatpush.msra.mxu2 %v690_v51  ;;  %v2134_v34 = vld [vmem:[%s2980_s7 + $0x60] sm:$0xff]  ;;  %v2158_v51 = vld [vmem:[%s2980_s7 + $0x50] sm:$0xff] }
  0x38   :  { %427 = vmatpush.msra.mxu0 %v319_v23  ;;  %832 = vmatpush.msra.mxu1 %v626_v39  ;;  %v730_v39 = vunpack.c.l.bf16 %v2105_v25 }
  0x39   :  { %872 = vmatpush.msra.mxu3 %v754_v52  ;;  %853 = vmatpush.msra.mxu2 %v686_v56  ;;  %v662_v52 = vunpack.c.l.bf16 %v2124_v32  ;;  %v726_v56 = vunpack.c.l.bf16 %v2129_v33 }
  0x3a   :  { %428 = vmatpush.msra.mxu0 %v315_v29  ;;  %833 = vmatpush.msra.mxu1 %v622_v41  ;;  %v2117_v29 = vld [vmem:[%s2980_s7 + $0x370] sm:$0xff]  ;;  %v594_v41 = vunpack.c.l.bf16 %v2110_v26 }
  0x3b   :  { %873 = vmatpush.msra.mxu3 %v750_v61  ;;  %854 = vmatpush.msra.mxu2 %v682_v1  ;;  %v2172_v1 = vld [vmem:[%s2980_s7 + $0x160] sm:$0xff] }
  0x3c   :  { %429 = vmatpush.msra.mxu0 %v311_v35  ;;  %834 = vmatpush.msra.mxu1 %v618_v49  ;;  %v666_v35 = vunpack.c.l.bf16 %v2100_v24  ;;  %v2148_v49 = vld [vmem:[%s2980_s7 + $0x170] sm:$0xff] }
  0x3d   :  { %874 = vmatpush.msra.mxu3 %v746_v2  ;;  %v2177_v2 = vld [vmem:[%s2980_s7 + $0x260] sm:$0xff] }
  0x3e   :  { %835 = vmatpush.msra.mxu1 %v614_v59  ;;  %v2165_v59 = vld [vmem:[%s2980_s7 + $0x350] sm:$0xff]  ;;  %3011 = vst [vmem:[#allocation2_spill] sm:$0xff] %v2177_v2 }
  0x40   :  { %836 = vmatpush.msra.mxu1 %v610_v6  ;;  %v2182_v6 = vld [vmem:[%s2980_s7 + $0x40] sm:$0xff] }
  0xa2   :  { %v191_v9 = vpop.f32.mrf.mxu0 }
  0xa3   :  { %v192_v10 = vadd.f32 %v1705_v8, %v191_v9  ;;  %v2052_v8 = vld [vmem:[%s2980_s7 + $0x1b0] sm:$0xff] }
  0xa4   :  { %v211_v11 = vpop.f32.mrf.mxu1  ;;  %v2057_v9 = vld [vmem:[%s2980_s7 + $0x90] sm:$0xff]  ;;  %v674_v19 = vunpack.c.l.bf16 %v2052_v8 }
  0xa5   :  { %v212_v12 = vadd.f32 %v211_v11, %v192_v10  ;;  %v678_v10 = vunpack.c.l.bf16 %v2040_v4  ;;  %v742_v11 = vunpack.c.l.bf16 %v2045_v5  ;;  %v602_v22 = vunpack.c.l.bf16 %v2057_v9 }
  0xa7   :  { %v231_v13 = vpop.f32.mrf.mxu2  ;;  %855 = vmatpush.msra.mxu2 %v678_v10  ;;  %875 = vmatpush.msra.mxu3 %v742_v11  ;;  %v2189_v11 = vld [vmem:[%s2980_s7 + $0x340] sm:$0xff] }
  0xa8   :  { %v232_v14 = vadd.f32 %v231_v13, %v212_v12  ;;  %v251_v15 = vpop.f32.mrf.mxu3  ;;  %v2064_v12 = vld [vmem:[%s2980_s7 + $0x390] sm:$0xff] }
  0xa9   :  { %v2069_v13 = vld [vmem:[%s2980_s7 + $0x2b0] sm:$0xff]  ;;  %v794_v23 = vunpack.c.l.bf16 %v2064_v12  ;;  %856 = vmatpush.msra.mxu2 %v674_v19 }
  0xaa   :  { %v252_v16 = vadd.f32 %v251_v15, %v232_v14  ;;  %v606_v14 = vunpack.c.l.bf16 %v2018_v62  ;;  %v798_v15 = vunpack.c.l.bf16 %v2035_v3  ;;  %v738_v20 = vunpack.c.l.bf16 %v2069_v13  ;;  %v2196_v19 = vld [vmem:[%s2980_s7 + $0x150] sm:$0xff] }
  0xab   :  { %3012 = vst [vmem:[#allocation3_spill] sm:$0xff] %v2196_v19 }
  0xac   :  { %v254_v17 = vmax.f32 %v252_v16, 0.0  ;;  %v2076_v16 = vld [vmem:[%s2980_s7 + $0x1a0] sm:$0xff]  ;;  %837 = vmatpush.msra.mxu1 %v606_v14  ;;  %876 = vmatpush.msra.mxu3 %v738_v20  ;;  %v586_v14 = vunpack.c.l.bf16 %v2158_v51  ;;  %v2201_v20 = vld [vmem:[%s2980_s7 + $0x250] sm:$0xff] }
  0xad   :  { %v670_v27 = vunpack.c.l.bf16 %v2076_v16  ;;  %3013 = vst [vmem:[#allocation4_spill] sm:$0xff] %v2201_v20 }
  0xae   :  { %1373 = vmatmul.msk.f32.vlgmr.msrb.gmra.mxu0 %vm267_vm0, %v254_v17  ;;  %v2081_v17 = vld [vmem:[%s2980_s7 + $0x2a0] sm:$0xff]  ;;  %838 = vmatpush.msra.mxu1 %v602_v22  ;;  %v2206_v22 = vld [vmem:[%s2980_s7 + $0x30] sm:$0xff] }
  0xaf   :  { %892 = vmatpush.msrb.mxu0 %v818_v40  ;;  %v734_v28 = vunpack.c.l.bf16 %v2081_v17  ;;  %v2141_v40 = vld [vmem:[%s2980_s7 + $0x360] sm:$0xff]  ;;  %857 = vmatpush.msra.mxu2 %v670_v27  ;;  %3014 = vst [vmem:[#allocation5_spill] sm:$0xff] %v2206_v22  ;;  %v718_v27 = vunpack.c.l.bf16 %v2177_v2  ;;  %v2261_v2 = vld [vmem:[%s2980_s7 + $0x10] sm:$0xff] }
  0xb0   :  { %839 = vmatpush.msra.mxu1 %v598_v30  ;;  %v782_v61 = vunpack.c.l.bf16 %v2141_v40  ;;  %v582_v30 = vunpack.c.l.bf16 %v2182_v6 }
  0xb1   :  { %893 = vmatpush.msrb.mxu0 %v814_v45  ;;  %v786_v45 = vunpack.c.l.bf16 %v2117_v29  ;;  %877 = vmatpush.msra.mxu3 %v734_v28  ;;  %v2213_v28 = vld [vmem:[%s2980_s7 + $0x330] sm:$0xff] }
  0xb2   :  { %858 = vmatpush.msra.mxu2 %v666_v35  ;;  %840 = vmatpush.msra.mxu1 %v594_v41  ;;  %3015 = vst [vmem:[#allocation6_spill] sm:$0xff] %v2213_v28  ;;  %v2220_v35 = vld [vmem:[%s2980_s7 + $0x140] sm:$0xff] }
  0xb3   :  { %894 = vmatpush.msrb.mxu0 %v810_v50  ;;  %v2153_v50 = vld [vmem:[%s2980_s7 + $0x270] sm:$0xff]  ;;  %878 = vmatpush.msra.mxu3 %v730_v39  ;;  %v2225_v39 = vld [vmem:[%s2980_s7 + $0x240] sm:$0xff] }
  0xb4   :  { %v722_v10 = vunpack.c.l.bf16 %v2153_v50  ;;  %859 = vmatpush.msra.mxu2 %v662_v52  ;;  %v2230_v41 = vld [vmem:[%s2980_s7 + $0x20] sm:$0xff]  ;;  %v714_v52 = vunpack.c.l.bf16 %v2201_v20  ;;  %v2252_v20 = vld [vmem:[%s2980_s7 + $0x230] sm:$0xff] }
  0xb5   :  { %895 = vmatpush.msrb.mxu0 %v806_v60  ;;  %v590_v60 = vunpack.c.l.bf16 %v2134_v34  ;;  %879 = vmatpush.msra.mxu3 %v726_v56  ;;  %v2237_v56 = vld [vmem:[%s2980_s7 + $0x320] sm:$0xff]  ;;  %3017 = vst [vmem:[#allocation8_spill] sm:$0xff] %v2252_v20 }
  0xb7   :  { %896 = vmatpush.msrb.mxu0 %v802_v7  ;;  %v658_v7 = vunpack.c.l.bf16 %v2148_v49  ;;  %841 = vmatpush.msra.mxu1 %v590_v60  ;;  %v1706_v60 = vld [vmem:[%s2977_s4] ss:$0 sm:$0xff] }
  0xb8   :  { %880 = vmatpush.msra.mxu3 %v722_v10  ;;  %v2247_v10 = vld [vmem:[%s2980_s7 + $0x130] sm:$0xff] }
  0xb9   :  { %897 = vmatpush.msrb.mxu0 %v798_v15  ;;  %v778_v15 = vunpack.c.l.bf16 %v2165_v59  ;;  %860 = vmatpush.msra.mxu2 %v658_v7  ;;  %v770_v7 = vunpack.c.l.bf16 %v2213_v28  ;;  %3016 = vst [vmem:[#allocation7_spill] sm:$0xff] %v2247_v10  ;;  %v766_v28 = vunpack.c.l.bf16 %v2237_v56 }
  0xba   :  { %842 = vmatpush.msra.mxu1 %v586_v14  ;;  %881 = vmatpush.msra.mxu3 %v718_v27  ;;  %v710_v14 = vunpack.c.l.bf16 %v2225_v39  ;;  %v642_v27 = vunpack.c.l.bf16 %v2247_v10  ;;  %v2297_v10 = vld [vmem:[%s2980_s7 + $0x110] sm:$0xff] }
  0xbb   :  { %898 = vmatpush.msrb.mxu0 %v794_v23  ;;  %v654_v23 = vunpack.c.l.bf16 %v2172_v1 }
  0xbc   :  { %843 = vmatpush.msra.mxu1 %v582_v30  ;;  %882 = vmatpush.msra.mxu3 %v714_v52  ;;  %v706_v30 = vunpack.c.l.bf16 %v2252_v20  ;;  %v2278_v52 = vld [vmem:[%s2980_s7 + $0x220] sm:$0xff] }
  0xbd   :  { %899 = vmatpush.msrb.mxu0 %v790_v31  ;;  %v774_v31 = vunpack.c.l.bf16 %v2189_v11  ;;  %861 = vmatpush.msra.mxu2 %v654_v23  ;;  %v2266_v23 = vld [vmem:[%s2980_s7 + $0x310] sm:$0xff]  ;;  %3020 = vst [vmem:[#allocation11_spill] sm:$0xff] %v2278_v52  ;;  %v2283_v20 = vld [vmem:[%s2980_s7] sm:$0xff] }
  0xbe   :  { %3018 = vst [vmem:[#allocation9_spill] sm:$0xff] %v2266_v23  ;;  %883 = vmatpush.msra.mxu3 %v710_v14  ;;  %v702_v14 = vunpack.c.l.bf16 %v2278_v52  ;;  %v2315_v52 = vld [vmem:[%s2980_s7 + $0x100] sm:$0xff] }
  0xbf   :  { %900 = vmatpush.msrb.mxu0 %v786_v45  ;;  %v650_v45 = vunpack.c.l.bf16 %v2196_v19  ;;  %v646_v19 = vunpack.c.l.bf16 %v2220_v35  ;;  %3021 = vst [vmem:[#allocation12_spill] sm:$0xff] %v2283_v20 }
  0xc0   :  { %884 = vmatpush.msra.mxu3 %v706_v30  ;;  %v627_v30 = vunpack.c.h.bf16 %v1936_v36  ;;  %v623_v36 = vunpack.c.h.bf16 %v1946_v38  ;;  %v755_v38 = vunpack.c.h.bf16 %v1980_v48  ;;  %v683_v48 = vunpack.c.h.bf16 %v2023_v63 }
  0xc1   :  { %901 = vmatpush.msrb.mxu0 %v782_v61  ;;  %v578_v61 = vunpack.c.l.bf16 %v2206_v22  ;;  %862 = vmatpush.msra.mxu2 %v650_v45  ;;  %v2273_v45 = vld [vmem:[%s2980_s7 + $0x120] sm:$0xff]  ;;  %v795_v63 = vunpack.c.h.bf16 %v2064_v12  ;;  %v595_v12 = vunpack.c.h.bf16 %v2110_v26  ;;  %v727_v26 = vunpack.c.h.bf16 %v2129_v33 }
  0xc2   :  { %3019 = vst [vmem:[#allocation10_spill] sm:$0xff] %v2273_v45  ;;  %885 = vmatpush.msra.mxu3 %v702_v14  ;;  %v807_v14 = vunpack.c.h.bf16 %v1989_v53  ;;  %v607_v53 = vunpack.c.h.bf16 %v2018_v62  ;;  %v739_v62 = vunpack.c.h.bf16 %v2069_v13  ;;  %v667_v13 = vunpack.c.h.bf16 %v2100_v24 }
  0xc3   :  { %902 = vmatpush.msrb.mxu0 %v778_v15  ;;  %v574_v15 = vunpack.c.l.bf16 %v2230_v41  ;;  %844 = vmatpush.msra.mxu1 %v578_v61  ;;  %v570_v61 = vunpack.c.l.bf16 %v2261_v2  ;;  %v779_v24 = vunpack.c.h.bf16 %v2165_v59  ;;  %v655_v33 = vunpack.c.h.bf16 %v2172_v1  ;;  %v3024_v59 = vld [vmem:[#allocation5_spill] sm:$0xff] }
  0xc4   :  { %863 = vmatpush.msra.mxu2 %v646_v19  ;;  %v638_v19 = vunpack.c.l.bf16 %v2273_v45  ;;  %v2320_v45 = vld [vmem:[%s2980_s7 + $0x200] sm:$0xff] }
  0xc5   :  { %903 = vmatpush.msrb.mxu0 %v774_v31  ;;  %845 = vmatpush.msra.mxu1 %v574_v15  ;;  %v2302_v15 = vld [vmem:[%s2980_s7 + $0x210] sm:$0xff] }
  0xc6   :  { %864 = vmatpush.msra.mxu2 %v642_v27 }
  0xc7   :  { %904 = vmatpush.msrb.mxu0 %v770_v7  ;;  %v762_v7 = vunpack.c.l.bf16 %v2266_v23  ;;  %846 = vmatpush.msra.mxu1 %v570_v61  ;;  %v694_v23 = vunpack.c.l.bf16 %v2320_v45  ;;  %v619_v61 = vunpack.c.h.bf16 %v1959_v43  ;;  %v751_v43 = vunpack.c.h.bf16 %v2005_v57 }
  0xc8   :  { %865 = vmatpush.msra.mxu2 %v638_v19  ;;  %v691_v19 = vunpack.c.h.bf16 %v1975_v47  ;;  %v803_v47 = vunpack.c.h.bf16 %v2010_v58  ;;  %v679_v57 = vunpack.c.h.bf16 %v2040_v4  ;;  %v603_v58 = vunpack.c.h.bf16 %v2057_v9 }
  0xc9   :  { %905 = vmatpush.msrb.mxu0 %v766_v28  ;;  %v566_v28 = vunpack.c.l.bf16 %v2283_v20  ;;  %v630_v20 = vunpack.c.l.bf16 %v2315_v52  ;;  %v791_v4 = vunpack.c.h.bf16 %v2093_v21  ;;  %v735_v9 = vunpack.c.h.bf16 %v2081_v17 }
  0xca   :  { %v591_v21 = vunpack.c.h.bf16 %v2134_v34  ;;  %v663_v17 = vunpack.c.h.bf16 %v2124_v32  ;;  %v723_v34 = vunpack.c.h.bf16 %v2153_v50  ;;  %v775_v32 = vunpack.c.h.bf16 %v2189_v11  ;;  %v3027_v11 = vld [vmem:[#allocation4_spill] sm:$0xff] }
  0xcb   :  { %906 = vmatpush.msrb.mxu0 %v762_v7  ;;  %847 = vmatpush.msra.mxu1 %v566_v28  ;;  %v811_v7 = vunpack.c.h.bf16 %v1964_v44  ;;  %v687_v28 = vunpack.c.h.bf16 %v1994_v54  ;;  %v611_v44 = vunpack.c.h.bf16 %v1999_v55  ;;  %v799_v54 = vunpack.c.h.bf16 %v2035_v3 }
  0xcc   :  { %v743_v55 = vunpack.c.h.bf16 %v2045_v5  ;;  %v599_v3 = vunpack.c.h.bf16 %v2086_v18  ;;  %v671_v5 = vunpack.c.h.bf16 %v2076_v16  ;;  %v731_v18 = vunpack.c.h.bf16 %v2105_v25 }
  0xcd   :  { %v783_v16 = vunpack.c.h.bf16 %v2141_v40  ;;  %v659_v25 = vunpack.c.h.bf16 %v2148_v49  ;;  %v583_v40 = vunpack.c.h.bf16 %v2182_v6  ;;  %v575_v50 = vunpack.c.h.bf16 %v2230_v41  ;;  %v3026_v6 = vld [vmem:[#allocation3_spill] sm:$0xff]  ;;  %v3029_v41 = vld [vmem:[#allocation12_spill] sm:$0xff] }
  0xce   :  { %v651_v1 = vunpack.c.h.bf16 %v3026_v6 }
 0x12b   :  { %v288_v22 = vpop.f32.mrf.mxu0 }
 0x12c   :  { %v289_v31 = vadd.f32 %v1706_v60, %v288_v22  ;;  %v2288_v22 = vld [vmem:[%s2980_s7 + $0x300] sm:$0xff] }
 0x12d   :  { %3022 = vst [vmem:[#allocation13_spill] sm:$0xff] %v2288_v22  ;;  %v758_v27 = vunpack.c.l.bf16 %v2288_v22  ;;  %v634_v22 = vunpack.c.l.bf16 %v2297_v10 }
 0x12e   :  { %v291_v60 = vmax.f32 %v289_v31, 0.0  ;;  %v819_v31 = vunpack.c.h.bf16 %v1941_v37  ;;  %v815_v37 = vunpack.c.h.bf16 %v1954_v42  ;;  %v615_v42 = vunpack.c.h.bf16 %v1970_v46 }
 0x12f   :  { %907 = vmatpush.msrb.mxu0 %v758_v27  ;;  %866 = vmatpush.msra.mxu2 %v634_v22  ;;  %v747_v46 = vunpack.c.h.bf16 %v2028_v0  ;;  %v675_v0 = vunpack.c.h.bf16 %v2052_v8  ;;  %v787_v8 = vunpack.c.h.bf16 %v2117_v29  ;;  %v587_v29 = vunpack.c.h.bf16 %v2158_v51  ;;  %v3025_v22 = vld [vmem:[#allocation6_spill] sm:$0xff] }
 0x130   :  { %1374 = vmatmul.msk.f32.vlgmr.msrb.gmra.mxu1 %vm350_vm1, %v291_v60  ;;  %1375 = vmatmul.msk.f32.vlgmr.msrb.gmra.mxu2 %vm350_vm1, %v291_v60  ;;  %v771_v49 = vunpack.c.h.bf16 %v3025_v22  ;;  %v715_v27 = vunpack.c.h.bf16 %v3027_v11  ;;  %v2479_v11 = vld [vmem:[%s2980_s7 + $0x3b8] sm:$0xff] }
 0x131   :  { %1376 = vmatmul.msk.f32.vlgmr.msrb.gmra.mxu3 %vm350_vm1, %v291_v60  ;;  %1377 = vmatmul.msk.f32.vlgmr.msra.gmra.mxu0 %vm350_vm1, %v291_v60  ;;  %v698_v60 = vunpack.c.l.bf16 %v2302_v15 }
 0x132   :  { %912 = vmatpush.msrb.mxu1 %v627_v30  ;;  %972 = vmatpush.msra.mxu0 %v819_v31  ;;  %v767_v30 = vunpack.c.h.bf16 %v2237_v56  ;;  %v571_v31 = vunpack.c.h.bf16 %v2261_v2  ;;  %v3033_v2 = vld [vmem:[#allocation10_spill] sm:$0xff] }
 0x133   :  { %886 = vmatpush.msra.mxu3 %v698_v60  ;;  %867 = vmatpush.msra.mxu2 %v630_v20  ;;  %v3023_v20 = vld [vmem:[#allocation2_spill] sm:$0xff]  ;;  %v647_v60 = vunpack.c.h.bf16 %v2220_v35  ;;  %v639_v35 = vunpack.c.h.bf16 %v3033_v2 }
 0x134   :  { %913 = vmatpush.msrb.mxu1 %v623_v36  ;;  %973 = vmatpush.msra.mxu0 %v815_v37  ;;  %v719_v51 = vunpack.c.h.bf16 %v3023_v20  ;;  %v711_v36 = vunpack.c.h.bf16 %v2225_v39  ;;  %v3028_v37 = vld [vmem:[#allocation9_spill] sm:$0xff]  ;;  %v3034_v39 = vld [vmem:[#allocation11_spill] sm:$0xff] }
 0x135   :  { %887 = vmatpush.msra.mxu3 %v694_v23  ;;  %932 = vmatpush.msrb.mxu2 %v691_v19  ;;  %v579_v23 = vunpack.c.h.bf16 %v3024_v59  ;;  %v3030_v19 = vld [vmem:[#allocation7_spill] sm:$0xff] }
 0x136   :  { %914 = vmatpush.msrb.mxu1 %v619_v61  ;;  %974 = vmatpush.msra.mxu0 %v811_v7  ;;  %v763_v61 = vunpack.c.h.bf16 %v3028_v37  ;;  %v567_v7 = vunpack.c.h.bf16 %v3029_v41  ;;  %v2509_v41 = vld [vmem:[%s2980_s7 + $0x98] sm:$0xff] }
 0x137   :  { %952 = vmatpush.msrb.mxu3 %v755_v38  ;;  %933 = vmatpush.msrb.mxu2 %v687_v28  ;;  %v643_v38 = vunpack.c.h.bf16 %v3030_v19 }
 0x138   :  { %915 = vmatpush.msrb.mxu1 %v615_v42  ;;  %975 = vmatpush.msra.mxu0 %v807_v14  ;;  %v3031_v42 = vld [vmem:[#allocation8_spill] sm:$0xff]  ;;  %v3032_v14 = vld [vmem:[#allocation13_spill] sm:$0xff] }
 0x139   :  { %953 = vmatpush.msrb.mxu3 %v751_v43  ;;  %934 = vmatpush.msrb.mxu2 %v683_v48  ;;  %v707_v56 = vunpack.c.h.bf16 %v3031_v42  ;;  %v759_v28 = vunpack.c.h.bf16 %v3032_v14  ;;  %v703_v43 = vunpack.c.h.bf16 %v3034_v39  ;;  %v631_v48 = vunpack.c.h.bf16 %v2315_v52  ;;  %v2399_v52 = vld [vmem:[%s2980_s7 + $0x3f8] sm:$0xff]  ;;  %v2521_v42 = vld [vmem:[%s2980_s7 + $0x2c8] sm:$0xff] }
 0x13a   :  { %916 = vmatpush.msrb.mxu1 %v611_v44  ;;  %976 = vmatpush.msra.mxu0 %v803_v47  ;;  %v635_v44 = vunpack.c.h.bf16 %v2297_v10  ;;  %v699_v47 = vunpack.c.h.bf16 %v2302_v15  ;;  %v2394_v10 = vld [vmem:[%s2980_s7 + $0xf8] sm:$0xff]  ;;  %v2537_v39 = vld [vmem:[%s2980_s7 + $0x88] sm:$0xff] }
 0x13b   :  { %954 = vmatpush.msrb.mxu3 %v747_v46  ;;  %935 = vmatpush.msrb.mxu2 %v679_v57  ;;  %v695_v46 = vunpack.c.h.bf16 %v2320_v45 }
 0x13c   :  { %917 = vmatpush.msrb.mxu1 %v607_v53  ;;  %977 = vmatpush.msra.mxu0 %v799_v54  ;;  %v340_v53 = vld [vmem:[%s2981_s6] sm:$0xf] }
 0x13d   :  { %955 = vmatpush.msrb.mxu3 %v743_v55  ;;  %936 = vmatpush.msrb.mxu2 %v675_v0  ;;  %v342_v54 = vperm.slane %v340_v53, 0  ;;  %v345_v57 = vperm.slane %v340_v53, 3  ;;  %v628_v0 = vunpack.c.l.bf16 %v2394_v10 }
 0x13e   :  { %918 = vmatpush.msrb.mxu1 %v603_v58  ;;  %978 = vmatpush.msra.mxu0 %v795_v63  ;;  %v2404_v58 = vld [vmem:[%s2980_s7 + $0xe8] sm:$0xff] }
 0x13f   :  { %956 = vmatpush.msrb.mxu3 %v739_v62  ;;  %937 = vmatpush.msrb.mxu2 %v671_v5  ;;  %v2410_v62 = vld [vmem:[%s2980_s7 + $0x3e8] sm:$0xff]  ;;  %v343_v5 = vperm.slane %v340_v53, 1 }
 0x140   :  { %919 = vmatpush.msrb.mxu1 %v599_v3  ;;  %979 = vmatpush.msra.mxu0 %v791_v4  ;;  %v820_v4 = vunpack.c.l.bf16 %v2399_v52 }
 0x141   :  { %957 = vmatpush.msrb.mxu3 %v735_v9  ;;  %938 = vmatpush.msrb.mxu2 %v667_v13  ;;  %v2418_v9 = vld [vmem:[%s2980_s7 + $0xd8] sm:$0xff]  ;;  %v624_v13 = vunpack.c.l.bf16 %v2404_v58 }
 0x142   :  { %920 = vmatpush.msrb.mxu1 %v595_v12  ;;  %980 = vmatpush.msra.mxu0 %v787_v8  ;;  %v344_v8 = vperm.slane %v340_v53, 2  ;;  %v2555_v53 = vld [vmem:[%s2980_s7 + $0x388] sm:$0xff] }
 0x143   :  { %958 = vmatpush.msrb.mxu3 %v731_v18  ;;  %939 = vmatpush.msrb.mxu2 %v663_v17  ;;  %v2426_v18 = vld [vmem:[%s2980_s7 + $0x3d8] sm:$0xff] }
 0x144   :  { %921 = vmatpush.msrb.mxu1 %v591_v21  ;;  %981 = vmatpush.msra.mxu0 %v783_v16  ;;  %v816_v21 = vunpack.c.l.bf16 %v2410_v62  ;;  %v2433_v16 = vld [vmem:[%s2980_s7 + $0xc8] sm:$0xff] }
 0x145   :  { %959 = vmatpush.msrb.mxu3 %v727_v26  ;;  %940 = vmatpush.msrb.mxu2 %v659_v25  ;;  %v620_v26 = vunpack.c.l.bf16 %v2418_v9  ;;  %v616_v20 = vunpack.c.l.bf16 %v2433_v16 }
 0x146   :  { %922 = vmatpush.msrb.mxu1 %v587_v29  ;;  %982 = vmatpush.msra.mxu0 %v779_v24  ;;  %v2440_v29 = vld [vmem:[%s2980_s7 + $0x1f8] sm:$0xff] }
 0x147   :  { %960 = vmatpush.msrb.mxu3 %v723_v34  ;;  %941 = vmatpush.msrb.mxu2 %v655_v33  ;;  %v2445_v24 = vld [vmem:[%s2980_s7 + $0x2f8] sm:$0xff] }
 0x148   :  { %923 = vmatpush.msrb.mxu1 %v583_v40  ;;  %983 = vmatpush.msra.mxu0 %v775_v32  ;;  %v812_v40 = vunpack.c.l.bf16 %v2426_v18  ;;  %v2451_v32 = vld [vmem:[%s2980_s7 + $0x3c8] sm:$0xff]  ;;  %v756_v22 = vunpack.c.l.bf16 %v2445_v24 }
 0x149   :  { %961 = vmatpush.msrb.mxu3 %v719_v51  ;;  %942 = vmatpush.msrb.mxu2 %v651_v1  ;;  %v2457_v51 = vld [vmem:[%s2980_s7 + $0xb8] sm:$0xff]  ;;  %v808_v1 = vunpack.c.l.bf16 %v2451_v32 }
 0x14a   :  { %924 = vmatpush.msrb.mxu1 %v579_v23  ;;  %984 = vmatpush.msra.mxu0 %v771_v49  ;;  %v692_v23 = vunpack.c.l.bf16 %v2440_v29  ;;  %v2466_v49 = vld [vmem:[%s2980_s7 + $0x1e8] sm:$0xff] }
 0x14b   :  { %962 = vmatpush.msrb.mxu3 %v715_v27  ;;  %943 = vmatpush.msrb.mxu2 %v647_v60  ;;  %v2484_v27 = vld [vmem:[%s2980_s7 + $0xa8] sm:$0xff]  ;;  %v2496_v60 = vld [vmem:[%s2980_s7 + $0x2d8] sm:$0xff] }
 0x14c   :  { %925 = vmatpush.msrb.mxu1 %v575_v50  ;;  %985 = vmatpush.msra.mxu0 %v767_v30  ;;  %v2471_v50 = vld [vmem:[%s2980_s7 + $0x2e8] sm:$0xff]  ;;  %v612_v30 = vunpack.c.l.bf16 %v2457_v51  ;;  %v608_v19 = vunpack.c.l.bf16 %v2484_v27  ;;  %v748_v14 = vunpack.c.l.bf16 %v2496_v60 }
 0x14d   :  { %963 = vmatpush.msrb.mxu3 %v711_v36  ;;  %944 = vmatpush.msrb.mxu2 %v643_v38  ;;  %v688_v36 = vunpack.c.l.bf16 %v2466_v49  ;;  %v752_v37 = vunpack.c.l.bf16 %v2471_v50  ;;  %v2516_v38 = vld [vmem:[%s2980_s7 + $0x1c8] sm:$0xff] }
 0x14e   :  { %926 = vmatpush.msrb.mxu1 %v571_v31  ;;  %986 = vmatpush.msra.mxu0 %v763_v61  ;;  %v2491_v31 = vld [vmem:[%s2980_s7 + $0x1d8] sm:$0xff]  ;;  %v2504_v61 = vld [vmem:[%s2980_s7 + $0x3a8] sm:$0xff] }
 0x14f   :  { %964 = vmatpush.msrb.mxu3 %v707_v56  ;;  %945 = vmatpush.msrb.mxu2 %v639_v35  ;;  %v684_v56 = vunpack.c.l.bf16 %v2491_v31  ;;  %v800_v2 = vunpack.c.l.bf16 %v2504_v61  ;;  %v604_v35 = vunpack.c.l.bf16 %v2509_v41 }
 0x150   :  { %927 = vmatpush.msrb.mxu1 %v567_v7  ;;  %987 = vmatpush.msra.mxu0 %v759_v28  ;;  %v804_v7 = vunpack.c.l.bf16 %v2479_v11  ;;  %v2529_v28 = vld [vmem:[%s2980_s7 + $0x398] sm:$0xff] }
 0x151   :  { %965 = vmatpush.msrb.mxu3 %v703_v43  ;;  %946 = vmatpush.msrb.mxu2 %v635_v44  ;;  %v680_v43 = vunpack.c.l.bf16 %v2516_v38  ;;  %v744_v44 = vunpack.c.l.bf16 %v2521_v42 }
 0x153   :  { %966 = vmatpush.msrb.mxu3 %v699_v47  ;;  %947 = vmatpush.msrb.mxu2 %v631_v48  ;;  %v2544_v47 = vld [vmem:[%s2980_s7 + $0x1b8] sm:$0xff] }
 0x154   :  { %v2549_v48 = vld [vmem:[%s2980_s7 + $0x2b8] sm:$0xff] }
 0x155   :  { %967 = vmatpush.msrb.mxu3 %v695_v46  ;;  %v796_v46 = vunpack.c.l.bf16 %v2529_v28 }
 0x1ad   :  { %v371_v15 = vpop.f32.mrf.mxu1 }
 0x1ae   :  { %v372_v45 = vadd.f32 %v371_v15, %v342_v54  ;;  %v431_v55 = vpop.f32.mrf.mxu0  ;;  %v2560_v54 = vld [vmem:[%s2980_s7 + $0x78] sm:$0xff]  ;;  %v2566_v15 = vld [vmem:[%s2980_s7 + $0x1a8] sm:$0xff] }
 0x1af   :  { %v432_v63 = vadd.f32 %v431_v55, %v345_v57  ;;  %v600_v57 = vunpack.c.l.bf16 %v2537_v39  ;;  %v676_v55 = vunpack.c.l.bf16 %v2544_v47 }
 0x1b0   :  { %v2412_v3 = vmax.f32 %v372_v45, 0.0  ;;  %v2571_v45 = vld [vmem:[%s2980_s7 + $0x2a8] sm:$0xff] }
 0x1b1   :  { %v2420_v12 = vmax.f32 %v432_v63, 0.0  ;;  %v740_v63 = vunpack.c.l.bf16 %v2549_v48 }
 0x1b2   :  { %3035 = vst [vmem:[#allocation2_spill] sm:$0xff] %v2412_v3  ;;  %848 = vmatmul.f32.vlgmr.msra.gmra.mxu1 %v2412_v3 }
 0x1b3   :  { %908 = vmatmul.f32.vlgmr.msrb.gmra.mxu0 %v2420_v12  ;;  %992 = vmatpush.msra.mxu1 %v628_v0  ;;  %v391_v17 = vpop.f32.mrf.mxu2  ;;  %v2578_v0 = vld [vmem:[%s2980_s7 + $0x378] sm:$0xff] }
 0x1b4   :  { %1052 = vmatpush.msrb.mxu0 %v820_v4  ;;  %v392_v25 = vadd.f32 %v391_v17, %v343_v5  ;;  %v411_v34 = vpop.f32.mrf.mxu3  ;;  %v2583_v4 = vld [vmem:[%s2980_s7 + $0x68] sm:$0xff]  ;;  %v792_v5 = vunpack.c.l.bf16 %v2555_v53  ;;  %v672_v17 = vunpack.c.l.bf16 %v2566_v15 }
 0x1b5   :  { %v412_v33 = vadd.f32 %v411_v34, %v344_v8  ;;  %993 = vmatpush.msra.mxu1 %v624_v13  ;;  %v596_v8 = vunpack.c.l.bf16 %v2560_v54  ;;  %v2590_v13 = vld [vmem:[%s2980_s7 + $0x198] sm:$0xff] }
 0x1b6   :  { %v2459_v59 = vmax.f32 %v392_v25, 0.0  ;;  %1053 = vmatpush.msrb.mxu0 %v816_v21  ;;  %v2595_v21 = vld [vmem:[%s2980_s7 + $0x298] sm:$0xff]  ;;  %v2603_v25 = vld [vmem:[%s2980_s7 + $0x368] sm:$0xff] }
 0x1b7   :  { %v2473_v6 = vmax.f32 %v412_v33, 0.0  ;;  %994 = vmatpush.msra.mxu1 %v620_v26  ;;  %v736_v26 = vunpack.c.l.bf16 %v2571_v45  ;;  %v2608_v34 = vld [vmem:[%s2980_s7 + $0x58] sm:$0xff]  ;;  %v592_v33 = vunpack.c.l.bf16 %v2583_v4 }
 0x1b8   :  { %1054 = vmatpush.msrb.mxu0 %v812_v40  ;;  %868 = vmatmul.f32.vlgmr.msra.gmra.mxu2 %v2459_v59  ;;  %v788_v40 = vunpack.c.l.bf16 %v2578_v0 }
 0x1b9   :  { %888 = vmatmul.f32.vlgmr.msra.gmra.mxu3 %v2473_v6  ;;  %995 = vmatpush.msra.mxu1 %v616_v20  ;;  %v2616_v20 = vld [vmem:[%s2980_s7 + $0x188] sm:$0xff] }
 0x1ba   :  { %1012 = vmatpush.msra.mxu2 %v692_v23  ;;  %1032 = vmatpush.msra.mxu3 %v756_v22  ;;  %v2621_v23 = vld [vmem:[%s2980_s7 + $0x288] sm:$0xff]  ;;  %v668_v22 = vunpack.c.l.bf16 %v2590_v13 }
 0x1bb   :  { %1055 = vmatpush.msrb.mxu0 %v808_v1  ;;  %928 = vmatmul.f32.vlgmr.msrb.gmra.mxu1 %v2412_v3  ;;  %v732_v1 = vunpack.c.l.bf16 %v2595_v21 }
 0x1bc   :  { %988 = vmatmul.f32.vlgmr.msra.gmra.mxu0 %v2420_v12  ;;  %996 = vmatpush.msra.mxu1 %v612_v30  ;;  %v2628_v30 = vld [vmem:[%s2980_s7 + $0x358] sm:$0xff] }
 0x1bd   :  { %1013 = vmatpush.msra.mxu2 %v688_v36  ;;  %1033 = vmatpush.msra.mxu3 %v752_v37  ;;  %v2633_v36 = vld [vmem:[%s2980_s7 + $0x48] sm:$0xff]  ;;  %v784_v37 = vunpack.c.l.bf16 %v2603_v25 }
 0x1be   :  { %1056 = vmatpush.msrb.mxu0 %v804_v7  ;;  %997 = vmatpush.msra.mxu1 %v608_v19  ;;  %v588_v7 = vunpack.c.l.bf16 %v2608_v34  ;;  %v2640_v19 = vld [vmem:[%s2980_s7 + $0x178] sm:$0xff] }
 0x1bf   :  { %1014 = vmatpush.msra.mxu2 %v684_v56  ;;  %1034 = vmatpush.msra.mxu3 %v748_v14  ;;  %v2645_v56 = vld [vmem:[%s2980_s7 + $0x278] sm:$0xff]  ;;  %v664_v14 = vunpack.c.l.bf16 %v2616_v20 }
 0x1c0   :  { %1057 = vmatpush.msrb.mxu0 %v800_v2  ;;  %998 = vmatpush.msra.mxu1 %v604_v35  ;;  %v728_v2 = vunpack.c.l.bf16 %v2621_v23  ;;  %v2652_v35 = vld [vmem:[%s2980_s7 + $0x348] sm:$0xff] }
 0x1c1   :  { %1015 = vmatpush.msra.mxu2 %v680_v43  ;;  %1035 = vmatpush.msra.mxu3 %v744_v44  ;;  %3036 = vst [vmem:[#allocation5_spill] sm:$0xff] %v2652_v35  ;;  %v2657_v43 = vld [vmem:[%s2980_s7 + $0x38] sm:$0xff]  ;;  %v780_v44 = vunpack.c.l.bf16 %v2628_v30 }
 0x1c2   :  { %1058 = vmatpush.msrb.mxu0 %v796_v46  ;;  %948 = vmatmul.f32.vlgmr.msrb.gmra.mxu2 %v2459_v59  ;;  %3037 = vst [vmem:[#allocation6_spill] sm:$0xff] %v2657_v43  ;;  %v584_v46 = vunpack.c.l.bf16 %v2633_v36 }
 0x1c3   :  { %968 = vmatmul.f32.vlgmr.msrb.gmra.mxu3 %v2473_v6  ;;  %999 = vmatpush.msra.mxu1 %v600_v57  ;;  %v2664_v57 = vld [vmem:[%s2980_s7 + $0x168] sm:$0xff] }
 0x1c4   :  { %1016 = vmatpush.msra.mxu2 %v676_v55  ;;  %1036 = vmatpush.msra.mxu3 %v740_v63  ;;  %3038 = vst [vmem:[#allocation3_spill] sm:$0xff] %v2664_v57  ;;  %v2669_v55 = vld [vmem:[%s2980_s7 + $0x268] sm:$0xff]  ;;  %v660_v63 = vunpack.c.l.bf16 %v2640_v19 }
 0x1c5   :  { %1059 = vmatpush.msrb.mxu0 %v792_v5  ;;  %1000 = vmatpush.msra.mxu1 %v596_v8  ;;  %3039 = vst [vmem:[#allocation4_spill] sm:$0xff] %v2669_v55  ;;  %v724_v5 = vunpack.c.l.bf16 %v2645_v56  ;;  %v2676_v8 = vld [vmem:[%s2980_s7 + $0x338] sm:$0xff] }
 0x1c6   :  { %1017 = vmatpush.msra.mxu2 %v672_v17  ;;  %1037 = vmatpush.msra.mxu3 %v736_v26  ;;  %3040 = vst [vmem:[#allocation9_spill] sm:$0xff] %v2676_v8  ;;  %v2681_v17 = vld [vmem:[%s2980_s7 + $0x28] sm:$0xff]  ;;  %v776_v26 = vunpack.c.l.bf16 %v2652_v35  ;;  %v772_v35 = vunpack.c.l.bf16 %v2676_v8 }
 0x1c7   :  { %1060 = vmatpush.msrb.mxu0 %v788_v40  ;;  %1001 = vmatpush.msra.mxu1 %v592_v33  ;;  %3041 = vst [vmem:[#allocation12_spill] sm:$0xff] %v2681_v17  ;;  %v580_v40 = vunpack.c.l.bf16 %v2657_v43  ;;  %v2688_v33 = vld [vmem:[%s2980_s7 + $0x158] sm:$0xff] }
 0x1c8   :  { %1018 = vmatpush.msra.mxu2 %v668_v22  ;;  %1038 = vmatpush.msra.mxu3 %v732_v1  ;;  %3042 = vst [vmem:[#allocation7_spill] sm:$0xff] %v2688_v33  ;;  %v2693_v22 = vld [vmem:[%s2980_s7 + $0x258] sm:$0xff]  ;;  %v656_v1 = vunpack.c.l.bf16 %v2664_v57  ;;  %v652_v57 = vunpack.c.l.bf16 %v2688_v33 }
 0x1c9   :  { %1061 = vmatpush.msrb.mxu0 %v784_v37  ;;  %1002 = vmatpush.msra.mxu1 %v588_v7  ;;  %3043 = vst [vmem:[#allocation8_spill] sm:$0xff] %v2693_v22  ;;  %v720_v37 = vunpack.c.l.bf16 %v2669_v55  ;;  %v2700_v7 = vld [vmem:[%s2980_s7 + $0x328] sm:$0xff]  ;;  %v2705_v43 = vld [vmem:[%s2980_s7 + $0x18] sm:$0xff] }
 0x1ca   :  { %1019 = vmatpush.msra.mxu2 %v664_v14  ;;  %1039 = vmatpush.msra.mxu3 %v728_v2  ;;  %3044 = vst [vmem:[#allocation13_spill] sm:$0xff] %v2700_v7  ;;  %v576_v14 = vunpack.c.l.bf16 %v2681_v17  ;;  %v2712_v2 = vld [vmem:[%s2980_s7 + $0x148] sm:$0xff]  ;;  %v768_v8 = vunpack.c.l.bf16 %v2700_v7 }
 0x1cb   :  { %3045 = vst [vmem:[#allocation10_spill] sm:$0xff] %v2705_v43  ;;  %1062 = vmatpush.msrb.mxu0 %v780_v44  ;;  %1003 = vmatpush.msra.mxu1 %v584_v46  ;;  %v2717_v55 = vld [vmem:[%s2980_s7 + $0x248] sm:$0xff]  ;;  %v716_v44 = vunpack.c.l.bf16 %v2693_v22  ;;  %v2724_v46 = vld [vmem:[%s2980_s7 + $0x318] sm:$0xff]  ;;  %v648_v33 = vunpack.c.l.bf16 %v2712_v2 }
 0x1cc   :  { %3046 = vst [vmem:[#allocation11_spill] sm:$0xff] %v2717_v55  ;;  %1020 = vmatpush.msra.mxu2 %v660_v63  ;;  %1040 = vmatpush.msra.mxu3 %v724_v5  ;;  %v2729_v17 = vld [vmem:[%s2980_s7 + $0x8] sm:$0xff]  ;;  %v572_v63 = vunpack.c.l.bf16 %v2705_v43  ;;  %v2736_v5 = vld [vmem:[%s2980_s7 + $0x138] sm:$0xff]  ;;  %v764_v43 = vunpack.c.l.bf16 %v2724_v46 }
 0x1cd   :  { %1063 = vmatpush.msrb.mxu0 %v776_v26  ;;  %1004 = vmatpush.msra.mxu1 %v580_v40  ;;  %v2741_v22 = vld [vmem:[%s2980_s7 + $0x238] sm:$0xff]  ;;  %v712_v26 = vunpack.c.l.bf16 %v2717_v55  ;;  %v2748_v40 = vld [vmem:[%s2980_s7 + $0x308] sm:$0xff]  ;;  %v568_v7 = vunpack.c.l.bf16 %v2729_v17 }
 0x1ce   :  { %1021 = vmatpush.msra.mxu2 %v656_v1  ;;  %1041 = vmatpush.msra.mxu3 %v720_v37  ;;  %3047 = vst [vmem:[#allocation14_spill] sm:$0xff] %v2748_v40  ;;  %v644_v1 = vunpack.c.l.bf16 %v2736_v5  ;;  %v708_v37 = vunpack.c.l.bf16 %v2741_v22  ;;  %v2757_v55 = vld [vmem:[%s2980_s7 + $0x128] sm:$0xff] }
 0x1cf   :  { %1064 = vmatpush.msrb.mxu0 %v772_v35  ;;  %1005 = vmatpush.msra.mxu1 %v576_v14  ;;  %v760_v35 = vunpack.c.l.bf16 %v2748_v40  ;;  %v2763_v14 = vld [vmem:[%s2980_s7 + $0x228] sm:$0xff]  ;;  %v2776_v40 = vld [vmem:[%s2980_s7 + $0x218] sm:$0xff] }
 0x1d0   :  { %1022 = vmatpush.msra.mxu2 %v652_v57  ;;  %1042 = vmatpush.msra.mxu3 %v716_v44  ;;  %v629_v57 = vunpack.c.h.bf16 %v2394_v10  ;;  %v2769_v44 = vld [vmem:[%s2980_s7 + $0x118] sm:$0xff]  ;;  %v704_v10 = vunpack.c.l.bf16 %v2763_v14 }
 0x1d1   :  { %1065 = vmatpush.msrb.mxu0 %v768_v8  ;;  %1006 = vmatpush.msra.mxu1 %v572_v63  ;;  %v821_v8 = vunpack.c.h.bf16 %v2399_v52  ;;  %v640_v63 = vunpack.c.l.bf16 %v2757_v55  ;;  %v817_v52 = vunpack.c.h.bf16 %v2410_v62 }
 0x1d2   :  { %1023 = vmatpush.msra.mxu2 %v648_v33  ;;  %1043 = vmatpush.msra.mxu3 %v712_v26  ;;  %v625_v33 = vunpack.c.h.bf16 %v2404_v58  ;;  %v2791_v26 = vld [vmem:[%s2980_s7 + $0x208] sm:$0xff]  ;;  %v700_v58 = vunpack.c.l.bf16 %v2776_v40 }
 0x1d3   :  { %1066 = vmatpush.msrb.mxu0 %v764_v43  ;;  %1007 = vmatpush.msra.mxu1 %v568_v7  ;;  %v2783_v43 = vld [vmem:[%s2980_s7 + $0x108] sm:$0xff]  ;;  %v636_v7 = vunpack.c.l.bf16 %v2769_v44 }
 0x1d4   :  { %1024 = vmatpush.msra.mxu2 %v644_v1  ;;  %1044 = vmatpush.msra.mxu3 %v708_v37  ;;  %v621_v1 = vunpack.c.h.bf16 %v2418_v9  ;;  %v813_v37 = vunpack.c.h.bf16 %v2426_v18  ;;  %v632_v62 = vunpack.c.l.bf16 %v2783_v43  ;;  %v757_v9 = vunpack.c.h.bf16 %v2445_v24 }
 0x1d5   :  { %1067 = vmatpush.msrb.mxu0 %v760_v35  ;;  %1008 = vmatmul.f32.vlgmr.msra.gmra.mxu1 %v2412_v3  ;;  %v696_v35 = vunpack.c.l.bf16 %v2791_v26  ;;  %v617_v3 = vunpack.c.h.bf16 %v2433_v16  ;;  %v809_v18 = vunpack.c.h.bf16 %v2451_v32  ;;  %v805_v16 = vunpack.c.h.bf16 %v2479_v11 }
 0x1d6   :  { %1068 = vmatmul.f32.vlgmr.msrb.gmra.mxu0 %v2420_v12  ;;  %1072 = vmatpush.msrb.mxu1 %v629_v57  ;;  %v693_v57 = vunpack.c.h.bf16 %v2440_v29  ;;  %v609_v29 = vunpack.c.h.bf16 %v2484_v27  ;;  %v685_v24 = vunpack.c.h.bf16 %v2491_v31  ;;  %v749_v32 = vunpack.c.h.bf16 %v2496_v60 }
 0x1d7   :  { %1132 = vmatpush.msra.mxu0 %v821_v8  ;;  %1025 = vmatpush.msra.mxu2 %v640_v63  ;;  %v613_v8 = vunpack.c.h.bf16 %v2457_v51  ;;  %v689_v63 = vunpack.c.h.bf16 %v2466_v49  ;;  %v801_v51 = vunpack.c.h.bf16 %v2504_v61  ;;  %v605_v49 = vunpack.c.h.bf16 %v2509_v41 }
 0x1d8   :  { %1045 = vmatpush.msra.mxu3 %v704_v10  ;;  %1073 = vmatpush.msrb.mxu1 %v625_v33  ;;  %v753_v10 = vunpack.c.h.bf16 %v2471_v50  ;;  %v745_v50 = vunpack.c.h.bf16 %v2521_v42  ;;  %v797_v11 = vunpack.c.h.bf16 %v2529_v28  ;;  %v601_v27 = vunpack.c.h.bf16 %v2537_v39  ;;  %v3049_v33 = vld [vmem:[#allocation6_spill] sm:$0xff] }
 0x1d9   :  { %1133 = vmatpush.msra.mxu0 %v817_v52  ;;  %1026 = vmatpush.msra.mxu2 %v636_v7  ;;  %v677_v31 = vunpack.c.h.bf16 %v2544_v47  ;;  %v741_v60 = vunpack.c.h.bf16 %v2549_v48  ;;  %v793_v61 = vunpack.c.h.bf16 %v2555_v53  ;;  %v597_v41 = vunpack.c.h.bf16 %v2560_v54  ;;  %v3051_v7 = vld [vmem:[#allocation4_spill] sm:$0xff] }
 0x1da   :  { %1046 = vmatpush.msra.mxu3 %v700_v58  ;;  %1074 = vmatpush.msrb.mxu1 %v621_v1  ;;  %v737_v42 = vunpack.c.h.bf16 %v2571_v45  ;;  %v789_v28 = vunpack.c.h.bf16 %v2578_v0  ;;  %v593_v39 = vunpack.c.h.bf16 %v2583_v4  ;;  %v669_v47 = vunpack.c.h.bf16 %v2590_v13  ;;  %v3053_v1 = vld [vmem:[#allocation12_spill] sm:$0xff] }
 0x1db   :  { %1134 = vmatpush.msra.mxu0 %v813_v37  ;;  %1027 = vmatpush.msra.mxu2 %v632_v62  ;;  %v733_v48 = vunpack.c.h.bf16 %v2595_v21  ;;  %v785_v53 = vunpack.c.h.bf16 %v2603_v25  ;;  %v589_v54 = vunpack.c.h.bf16 %v2608_v34  ;;  %v729_v45 = vunpack.c.h.bf16 %v2621_v23  ;;  %v3048_v25 = vld [vmem:[#allocation5_spill] sm:$0xff]  ;;  %v3050_v23 = vld [vmem:[#allocation3_spill] sm:$0xff]  ;;  %v3055_v62 = vld [vmem:[#allocation8_spill] sm:$0xff] }
 0x1dc   :  { %1047 = vmatpush.msra.mxu3 %v696_v35  ;;  %1028 = vmatmul.f32.vlgmr.msra.gmra.mxu2 %v2459_v59  ;;  %v781_v0 = vunpack.c.h.bf16 %v2628_v30  ;;  %v585_v4 = vunpack.c.h.bf16 %v2633_v36  ;;  %v661_v13 = vunpack.c.h.bf16 %v2640_v19  ;;  %v725_v21 = vunpack.c.h.bf16 %v2645_v56  ;;  %v3052_v36 = vld [vmem:[#allocation9_spill] sm:$0xff]  ;;  %v3054_v56 = vld [vmem:[#allocation7_spill] sm:$0xff] }
 0x1dd   :  { %1048 = vmatmul.f32.vlgmr.msra.gmra.mxu3 %v2473_v6  ;;  %1075 = vmatpush.msrb.mxu1 %v617_v3  ;;  %v681_v3 = vunpack.c.h.bf16 %v2516_v38  ;;  %v673_v38 = vunpack.c.h.bf16 %v2566_v15  ;;  %v665_v15 = vunpack.c.h.bf16 %v2616_v20  ;;  %v777_v34 = vunpack.c.h.bf16 %v3048_v25 }
 0x1de   :  { %1092 = vmatpush.msrb.mxu2 %v693_v57  ;;  %1112 = vmatpush.msrb.mxu3 %v757_v9  ;;  %v581_v20 = vunpack.c.h.bf16 %v3049_v33  ;;  %v657_v52 = vunpack.c.h.bf16 %v3050_v23  ;;  %v721_v30 = vunpack.c.h.bf16 %v3051_v7  ;;  %v773_v58 = vunpack.c.h.bf16 %v3052_v36  ;;  %v3056_v57 = vld [vmem:[#allocation13_spill] sm:$0xff]  ;;  %v1674_v33 = vld [vmem:[%s2982_s9 + $0x8] sm:$0xff]   ;;  %v1515_v23 = vld [vmem:[%s2982_s9] sm:$0xff]  }
 0x1df   :  { %1135 = vmatpush.msra.mxu0 %v809_v18  ;;  %1076 = vmatpush.msrb.mxu1 %v613_v8  ;;  %v577_v19 = vunpack.c.h.bf16 %v3053_v1  ;;  %v653_v37 = vunpack.c.h.bf16 %v3054_v56  ;;  %v717_v35 = vunpack.c.h.bf16 %v3055_v62  ;;  %v769_v9 = vunpack.c.h.bf16 %v3056_v57  ;;  %v3057_v18 = vld [vmem:[#allocation10_spill] sm:$0xff]  ;;  %v1696_v62 = vld [vmem:[%s2982_s9 + $0xb8] sm:$0xff]   ;;  %v1682_v57 = vld [vmem:[%s2982_s9 + $0x48] sm:$0xff]  }
 0x1e0   :  { %1093 = vmatpush.msrb.mxu2 %v689_v63  ;;  %1113 = vmatpush.msrb.mxu3 %v753_v10  ;;  %v573_v8 = vunpack.c.h.bf16 %v3057_v18  ;;  %v649_v63 = vunpack.c.h.bf16 %v2712_v2  ;;  %v3058_v10 = vld [vmem:[#allocation11_spill] sm:$0xff]  ;;  %v3059_v2 = vld [vmem:[#allocation14_spill] sm:$0xff]  ;;  %v1517_v1 = vunpack.c.h.bf16 %v1515_v23  ;;  %v1516_v56 = vunpack.c.l.bf16 %v1515_v23 }
 0x1e1   :  { %1136 = vmatpush.msra.mxu0 %v805_v16  ;;  %1077 = vmatpush.msrb.mxu1 %v609_v29  ;;  %v713_v16 = vunpack.c.h.bf16 %v3058_v10  ;;  %v765_v29 = vunpack.c.h.bf16 %v2724_v46  ;;  %v641_v46 = vunpack.c.h.bf16 %v2757_v55  ;;  %v633_v55 = vunpack.c.h.bf16 %v2783_v43  ;;  %v1681_v10 = vld [vmem:[%s2982_s9 + $0x40] sm:$0xff]  }
 0x1e2   :  { %1094 = vmatpush.msrb.mxu2 %v685_v24  ;;  %1114 = vmatpush.msrb.mxu3 %v749_v32  ;;  %v569_v24 = vunpack.c.h.bf16 %v2729_v17  ;;  %v645_v32 = vunpack.c.h.bf16 %v2736_v5  ;;  %v705_v17 = vunpack.c.h.bf16 %v2763_v14  ;;  %v3060_v5 = vld [vmem:[#allocation2_spill] sm:$0xff]  ;;  %v1688_v14 = vld [vmem:[%s2982_s9 + $0x78] sm:$0xff]   ;;  %v1608_v18 = vunpack.c.l.bf16 %v1696_v62 }
 0x1e3   :  { %1137 = vmatpush.msra.mxu0 %v801_v51  ;;  %1078 = vmatpush.msrb.mxu1 %v605_v49  ;;  %v709_v51 = vunpack.c.h.bf16 %v2741_v22  ;;  %v1680_v49 = vld [vmem:[%s2982_s9 + $0x38] sm:$0xff]   ;;  %v637_v22 = vunpack.c.h.bf16 %v2769_v44  ;;  %v697_v44 = vunpack.c.h.bf16 %v2791_v26 }
 0x1e4   :  { %1095 = vmatpush.msrb.mxu2 %v681_v3  ;;  %1115 = vmatpush.msrb.mxu3 %v745_v50  ;;  %v761_v3 = vunpack.c.h.bf16 %v3059_v2  ;;  %v1545_v50 = vunpack.c.h.bf16 %v1680_v49  ;;  %v2923_v2 = vld [vmem:[%s2984_s8] sm:$0xf] }
 0x1e5   :  { %1138 = vmatpush.msra.mxu0 %v797_v11  ;;  %1079 = vmatpush.msrb.mxu1 %v601_v27  ;;  %v701_v11 = vunpack.c.h.bf16 %v2776_v40  ;;  %v1544_v27 = vunpack.c.l.bf16 %v1680_v49 }
 0x1e6   :  { %1096 = vmatpush.msrb.mxu2 %v677_v31  ;;  %1116 = vmatpush.msrb.mxu3 %v741_v60  ;;  %v1679_v31 = vld [vmem:[%s2982_s9 + $0x30] sm:$0xff]   ;;  %v1678_v60 = vld [vmem:[%s2982_s9 + $0x28] sm:$0xff]  }
 0x1e7   :  { %1139 = vmatpush.msra.mxu0 %v793_v61  ;;  %1080 = vmatpush.msrb.mxu1 %v597_v41  ;;  %v1541_v40 = vunpack.c.h.bf16 %v1679_v31  ;;  %v1540_v61 = vunpack.c.l.bf16 %v1679_v31  ;;  %v1537_v43 = vunpack.c.h.bf16 %v1678_v60  ;;  %v1536_v26 = vunpack.c.l.bf16 %v1678_v60  ;;  %v1691_v31 = vld [vmem:[%s2982_s9 + $0x90] sm:$0xff]  }
 0x1e8   :  { %1097 = vmatpush.msrb.mxu2 %v673_v38  ;;  %1117 = vmatpush.msrb.mxu3 %v737_v42  ;;  %v1576_v41 = vunpack.c.l.bf16 %v1688_v14  ;;  %v1677_v38 = vld [vmem:[%s2982_s9 + $0x20] sm:$0xff]   ;;  %v1687_v42 = vld [vmem:[%s2982_s9 + $0x70] sm:$0xff]   ;;  %v1589_v60 = vunpack.c.h.bf16 %v1691_v31 }
 0x1e9   :  { %1140 = vmatpush.msra.mxu0 %v789_v28  ;;  %1081 = vmatpush.msrb.mxu1 %v593_v39  ;;  %v1533_v28 = vunpack.c.h.bf16 %v1677_v38  ;;  %v1573_v39 = vunpack.c.h.bf16 %v1687_v42 }
 0x1ea   :  { %1098 = vmatpush.msrb.mxu2 %v669_v47  ;;  %1118 = vmatpush.msrb.mxu3 %v733_v48  ;;  %v1532_v47 = vunpack.c.l.bf16 %v1677_v38  ;;  %v1572_v48 = vunpack.c.l.bf16 %v1687_v42  ;;  %v1588_v38 = vunpack.c.l.bf16 %v1691_v31 }
 0x1eb   :  { %1141 = vmatpush.msra.mxu0 %v785_v53  ;;  %1082 = vmatpush.msrb.mxu1 %v589_v54 }
 0x1ec   :  { %1099 = vmatpush.msrb.mxu2 %v665_v15  ;;  %1119 = vmatpush.msrb.mxu3 %v729_v45 }
 0x1ed   :  { %1142 = vmatpush.msra.mxu0 %v781_v0  ;;  %1083 = vmatpush.msrb.mxu1 %v585_v4  ;;  %v1675_v0 = vld [vmem:[%s2982_s9 + $0x10] sm:$0xff]   ;;  %v1685_v4 = vld [vmem:[%s2982_s9 + $0x60] sm:$0xff]  }
 0x1ee   :  { %1100 = vmatpush.msrb.mxu2 %v661_v13  ;;  %1120 = vmatpush.msrb.mxu3 %v725_v21  ;;  %v1525_v13 = vunpack.c.h.bf16 %v1675_v0  ;;  %v1565_v21 = vunpack.c.h.bf16 %v1685_v4  ;;  %v1524_v25 = vunpack.c.l.bf16 %v1675_v0 }
 0x1ef   :  { %1143 = vmatpush.msra.mxu0 %v777_v34  ;;  %1084 = vmatpush.msrb.mxu1 %v581_v20  ;;  %v1564_v34 = vunpack.c.l.bf16 %v1685_v4  ;;  %v1684_v20 = vld [vmem:[%s2982_s9 + $0x58] sm:$0xff]  }
 0x1f0   :  { %1101 = vmatpush.msrb.mxu2 %v657_v52  ;;  %1121 = vmatpush.msrb.mxu3 %v721_v30  ;;  %v1521_v52 = vunpack.c.h.bf16 %v1674_v33  ;;  %v1561_v7 = vunpack.c.h.bf16 %v1684_v20  ;;  %v1520_v30 = vunpack.c.l.bf16 %v1674_v33  ;;  %v1560_v36 = vunpack.c.l.bf16 %v1684_v20 }
 0x1f1   :  { %1144 = vmatpush.msra.mxu0 %v773_v58  ;;  %1085 = vmatpush.msrb.mxu1 %v577_v19  ;;  %v1683_v58 = vld [vmem:[%s2982_s9 + $0x50] sm:$0xff]  }
 0x1f2   :  { %1102 = vmatpush.msrb.mxu2 %v653_v37  ;;  %1122 = vmatpush.msrb.mxu3 %v717_v35  ;;  %v1557_v19 = vunpack.c.h.bf16 %v1683_v58  ;;  %v1556_v37 = vunpack.c.l.bf16 %v1683_v58  ;;  %v1609_v35 = vunpack.c.h.bf16 %v1696_v62 }
 0x1f3   :  { %1145 = vmatpush.msra.mxu0 %v769_v9  ;;  %1086 = vmatpush.msrb.mxu1 %v573_v8  ;;  %v1553_v9 = vunpack.c.h.bf16 %v1682_v57  ;;  %v1552_v8 = vunpack.c.l.bf16 %v1682_v57 }
 0x1f4   :  { %1103 = vmatpush.msrb.mxu2 %v649_v63  ;;  %1123 = vmatpush.msrb.mxu3 %v713_v16  ;;  %v1695_v63 = vld [vmem:[%s2982_s9 + $0xb0] sm:$0xff]  }
 0x1f5   :  { %1146 = vmatpush.msra.mxu0 %v765_v29  ;;  %1087 = vmatpush.msrb.mxu1 %v569_v24  ;;  %v1605_v16 = vunpack.c.h.bf16 %v1695_v63  ;;  %v1549_v29 = vunpack.c.h.bf16 %v1681_v10  ;;  %v1604_v24 = vunpack.c.l.bf16 %v1695_v63 }
 0x1f6   :  { %1104 = vmatpush.msrb.mxu2 %v645_v32  ;;  %1124 = vmatpush.msrb.mxu3 %v709_v51  ;;  %v1694_v32 = vld [vmem:[%s2982_s9 + $0xa8] sm:$0xff]   ;;  %v1548_v51 = vunpack.c.l.bf16 %v1681_v10 }
 0x1f7   :  { %1147 = vmatpush.msra.mxu0 %v761_v3  ;;  %1088 = vmatmul.f32.vlgmr.msrb.gmra.mxu1 %v3060_v5  ;;  %v1601_v49 = vunpack.c.h.bf16 %v1694_v32  ;;  %v1600_v3 = vunpack.c.l.bf16 %v1694_v32 }
 0x1f8   :  { %1148 = vmatmul.f32.vlgmr.msra.gmra.mxu0 %v2420_v12  ;;  %1105 = vmatpush.msrb.mxu2 %v641_v46  ;;  %v1577_v12 = vunpack.c.h.bf16 %v1688_v14  ;;  %v1693_v46 = vld [vmem:[%s2982_s9 + $0xa0] sm:$0xff]  }
 0x1f9   :  { %1125 = vmatpush.msrb.mxu3 %v705_v17  ;;  %1288 = vmatpush.msra.mxu1 %v1545_v50  ;;  %v1597_v17 = vunpack.c.h.bf16 %v1693_v46  ;;  %v1692_v50 = vld [vmem:[%s2982_s9 + $0x98] sm:$0xff]   ;;  %v1596_v5 = vunpack.c.l.bf16 %v1693_v46 }
 0x1fa   :  { %1106 = vmatpush.msrb.mxu2 %v637_v22  ;;  %v824_v22 = vperm.slane %v2923_v2, 0  ;;  %v1592_v14 = vunpack.c.l.bf16 %v1692_v50 }
 0x1fb   :  { %1126 = vmatpush.msrb.mxu3 %v701_v11  ;;  %1289 = vmatpush.msra.mxu1 %v1544_v27  ;;  %v1593_v27 = vunpack.c.h.bf16 %v1692_v50  ;;  %v1697_v50 = vld [vmem:[%s2982_s9 + $0xc0] sm:$0xff]  }
 0x1fc   :  { %1107 = vmatpush.msrb.mxu2 %v633_v55 }
 0x1fd   :  { %1127 = vmatpush.msrb.mxu3 %v697_v44  ;;  %1108 = vmatmul.f32.vlgmr.msrb.gmra.mxu2 %v2459_v59  ;;  %v1676_v59 = vld [vmem:[%s2982_s9 + $0x18] sm:$0xff]  }
 0x1fe   :  { %1128 = vmatmul.f32.vlgmr.msrb.gmra.mxu3 %v2473_v6  ;;  %1290 = vmatpush.msra.mxu1 %v1541_v40  ;;  %v1686_v6 = vld [vmem:[%s2982_s9 + $0x68] sm:$0xff]   ;;  %v1529_v53 = vunpack.c.h.bf16 %v1676_v59  ;;  %v1528_v15 = vunpack.c.l.bf16 %v1676_v59 }
 0x1ff   :  { %1308 = vmatpush.msra.mxu2 %v1577_v12  ;;  %v1569_v54 = vunpack.c.h.bf16 %v1686_v6  ;;  %v1568_v45 = vunpack.c.l.bf16 %v1686_v6  ;;  %1328 = vmatpush.msra.mxu3 %v1609_v35  ;;  %v1699_v35 = vld [vmem:[%s2982_s9 + $0xd0] sm:$0xff]  }
 0x200   :  { %1291 = vmatpush.msra.mxu1 %v1540_v61 }
 0x201   :  { %1309 = vmatpush.msra.mxu2 %v1576_v41  ;;  %1329 = vmatpush.msra.mxu3 %v1608_v18 }
 0x202   :  { %1292 = vmatpush.msra.mxu1 %v1537_v43 }
 0x203   :  { %1310 = vmatpush.msra.mxu2 %v1573_v39  ;;  %1330 = vmatpush.msra.mxu3 %v1605_v16  ;;  %v1620_v16 = vunpack.c.l.bf16 %v1699_v35 }
 0x204   :  { %1293 = vmatpush.msra.mxu1 %v1536_v26  ;;  %v825_v26 = vperm.slane %v2923_v2, 1 }
 0x205   :  { %1311 = vmatpush.msra.mxu2 %v1572_v48  ;;  %1331 = vmatpush.msra.mxu3 %v1604_v24  ;;  %v1698_v24 = vld [vmem:[%s2982_s9 + $0xc8] sm:$0xff]  }
 0x206   :  { %1294 = vmatpush.msra.mxu1 %v1533_v28  ;;  %v1690_v28 = vld [vmem:[%s2982_s9 + $0x88] sm:$0xff]   ;;  %v1616_v46 = vunpack.c.l.bf16 %v1698_v24 }
 0x207   :  { %1312 = vmatpush.msra.mxu2 %v1569_v54  ;;  %1332 = vmatpush.msra.mxu3 %v1601_v49  ;;  %v1585_v59 = vunpack.c.h.bf16 %v1690_v28 }
 0x208   :  { %1295 = vmatpush.msra.mxu1 %v1532_v47  ;;  %v1584_v47 = vunpack.c.l.bf16 %v1690_v28 }
 0x209   :  { %1313 = vmatpush.msra.mxu2 %v1568_v45  ;;  %1333 = vmatpush.msra.mxu3 %v1600_v3 }
 0x20a   :  { %1296 = vmatpush.msra.mxu1 %v1529_v53  ;;  %v1689_v53 = vld [vmem:[%s2982_s9 + $0x80] sm:$0xff]  }
 0x20b   :  { %1314 = vmatpush.msra.mxu2 %v1565_v21  ;;  %1334 = vmatpush.msra.mxu3 %v1597_v17  ;;  %v1580_v45 = vunpack.c.l.bf16 %v1689_v53  ;;  %v1703_v21 = vld [vmem:[%s2982_s9 + $0xf0] sm:$0xff]  }
 0x20c   :  { %1297 = vmatpush.msra.mxu1 %v1528_v15  ;;  %v1581_v15 = vunpack.c.h.bf16 %v1689_v53  ;;  %v1637_v23 = vunpack.c.h.bf16 %v1703_v21 }
 0x20d   :  { %1315 = vmatpush.msra.mxu2 %v1564_v34  ;;  %1335 = vmatpush.msra.mxu3 %v1596_v5 }
 0x20e   :  { %1298 = vmatpush.msra.mxu1 %v1525_v13  ;;  %v1704_v13 = vld [vmem:[%s2982_s9 + $0xf8] sm:$0xff]  }
 0x20f   :  { %1316 = vmatpush.msra.mxu2 %v1561_v7  ;;  %1336 = vmatpush.msra.mxu3 %v1593_v27  ;;  %v1641_v34 = vunpack.c.h.bf16 %v1704_v13  ;;  %v1640_v33 = vunpack.c.l.bf16 %v1704_v13  ;;  %v1702_v7 = vld [vmem:[%s2982_s9 + $0xe8] sm:$0xff]   ;;  %v827_v27 = vperm.slane %v2923_v2, 3 }
 0x210   :  { %1299 = vmatpush.msra.mxu1 %v1524_v25  ;;  %v1632_v58 = vunpack.c.l.bf16 %v1702_v7 }
 0x211   :  { %1317 = vmatpush.msra.mxu2 %v1560_v36  ;;  %1337 = vmatpush.msra.mxu3 %v1592_v14  ;;  %v1633_v36 = vunpack.c.h.bf16 %v1702_v7 }
 0x212   :  { %1300 = vmatpush.msra.mxu1 %v1521_v52  ;;  %1348 = vmatpush.msrb.mxu0 %v1641_v34 }
 0x213   :  { %1318 = vmatpush.msra.mxu2 %v1557_v19  ;;  %1338 = vmatpush.msra.mxu3 %v1589_v60 }
 0x214   :  { %1301 = vmatpush.msra.mxu1 %v1520_v30  ;;  %1349 = vmatpush.msrb.mxu0 %v1640_v33  ;;  %v1636_v30 = vunpack.c.l.bf16 %v1703_v21 }
 0x215   :  { %1319 = vmatpush.msra.mxu2 %v1556_v37  ;;  %1339 = vmatpush.msra.mxu3 %v1588_v38  ;;  %v1700_v37 = vld [vmem:[%s2982_s9 + $0xd8] sm:$0xff]  }
 0x216   :  { %1302 = vmatpush.msra.mxu1 %v1517_v1  ;;  %1350 = vmatpush.msrb.mxu0 %v1637_v23  ;;  %v1701_v1 = vld [vmem:[%s2982_s9 + $0xe0] sm:$0xff]   ;;  %v1625_v62 = vunpack.c.h.bf16 %v1700_v37  ;;  %v1624_v57 = vunpack.c.l.bf16 %v1700_v37 }
 0x217   :  { %1320 = vmatpush.msra.mxu2 %v1553_v9  ;;  %1340 = vmatpush.msra.mxu3 %v1585_v59  ;;  %v1629_v19 = vunpack.c.h.bf16 %v1701_v1  ;;  %v826_v9 = vperm.slane %v2923_v2, 2 }
 0x218   :  { %1303 = vmatpush.msra.mxu1 %v1516_v56  ;;  %1351 = vmatpush.msrb.mxu0 %v1636_v30  ;;  %v1628_v56 = vunpack.c.l.bf16 %v1701_v1 }
 0x219   :  { %1321 = vmatpush.msra.mxu2 %v1552_v8  ;;  %1341 = vmatpush.msra.mxu3 %v1584_v47  ;;  %v1621_v8 = vunpack.c.h.bf16 %v1699_v35 }
 0x21a   :  { %1352 = vmatpush.msrb.mxu0 %v1633_v36 }
 0x21b   :  { %1322 = vmatpush.msra.mxu2 %v1549_v29  ;;  %1342 = vmatpush.msra.mxu3 %v1581_v15 }
 0x21c   :  { %1353 = vmatpush.msrb.mxu0 %v1632_v58 }
 0x21d   :  { %1323 = vmatpush.msra.mxu2 %v1548_v51  ;;  %1343 = vmatpush.msra.mxu3 %v1580_v45  ;;  %v1617_v51 = vunpack.c.h.bf16 %v1698_v24 }
 0x21e   :  { %1354 = vmatpush.msrb.mxu0 %v1629_v19 }
 0x220   :  { %1355 = vmatpush.msrb.mxu0 %v1628_v56 }
 0x222   :  { %1356 = vmatpush.msrb.mxu0 %v1625_v62 }
 0x224   :  { %1357 = vmatpush.msrb.mxu0 %v1624_v57 }
 0x226   :  { %1358 = vmatpush.msrb.mxu0 %v1621_v8 }
 0x228   :  { %1359 = vmatpush.msrb.mxu0 %v1620_v16 }
 0x22a   :  { %1360 = vmatpush.msrb.mxu0 %v1617_v51 }
 0x22c   :  { %1361 = vmatpush.msrb.mxu0 %v1616_v46 }
 0x22f   :  { %v849_v11 = vpop.f32.mrf.mxu1 }
 0x230   :  { %v850_v55 = vadd.f32 %v849_v11, %v824_v22  ;;  %v909_v43 = vpop.f32.mrf.mxu0  ;;  %v1613_v22 = vunpack.c.h.bf16 %v1697_v50  ;;  %v1612_v11 = vunpack.c.l.bf16 %v1697_v50 }
 0x232   :  { %1362 = vmatpush.msrb.mxu0 %v1613_v22 }
 0x234   :  { %1363 = vmatpush.msrb.mxu0 %v1612_v11 }
 0x238   :  { %v929_v42 = vpop.f32.mrf.mxu1 }
 0x239   :  { %v930_v6 = vadd.f32 %v929_v42, %v825_v26  ;;  %v989_v25 = vpop.f32.mrf.mxu0  ;;  %v1707_v26 = vld [vmem:[%s2983_s10] ss:$0 sm:$0xff] }
 0x23b   :  { %v869_v44 = vpop.f32.mrf.mxu2 }
 0x23c   :  { %v870_v40 = vadd.f32 %v869_v44, %v850_v55  ;;  %v889_v12 = vpop.f32.mrf.mxu3 }
 0x23e   :  { %v890_v61 = vadd.f32 %v889_v12, %v870_v40 }
 0x240   :  { %v910_v41 = vadd.f32 %v909_v43, %v890_v61 }
 0x242   :  { %v1152_v39 = vmax.f32 %v910_v41, 0.0 }
 0x244   :  { %1304 = vmatmul.f32.vlgmr.msra.gmra.mxu1 %v1152_v39 }
 0x245   :  { %v949_v48 = vpop.f32.mrf.mxu2 }
 0x246   :  { %v950_v54 = vadd.f32 %v949_v48, %v930_v6  ;;  %v969_v0 = vpop.f32.mrf.mxu3 }
 0x248   :  { %v970_v4 = vadd.f32 %v969_v0, %v950_v54 }
 0x24a   :  { %v990_v20 = vadd.f32 %v989_v25, %v970_v4 }
 0x24c   :  { %v1153_v52 = vmax.f32 %v990_v20, 0.0 }
 0x24e   :  { %1324 = vmatmul.f32.vlgmr.msra.gmra.mxu2 %v1153_v52 }
 0x252   :  { %v1009_v18 = vpop.f32.mrf.mxu1 }
 0x253   :  { %v1010_v63 = vadd.f32 %v1009_v18, %v826_v9  ;;  %v1069_v3 = vpop.f32.mrf.mxu0 }
 0x25f   :  { %v1029_v10 = vpop.f32.mrf.mxu2 }
 0x260   :  { %v1030_v29 = vadd.f32 %v1029_v10, %v1010_v63  ;;  %v1049_v32 = vpop.f32.mrf.mxu3 }
 0x262   :  { %v1050_v49 = vadd.f32 %v1049_v32, %v1030_v29 }
 0x264   :  { %v1070_v17 = vadd.f32 %v1069_v3, %v1050_v49 }
 0x266   :  { %v1154_v5 = vmax.f32 %v1070_v17, 0.0 }
 0x268   :  { %1344 = vmatmul.f32.vlgmr.msra.gmra.mxu3 %v1154_v5 }
 0x274   :  { %v1089_v31 = vpop.f32.mrf.mxu1 }
 0x275   :  { %v1090_v55 = vadd.f32 %v1089_v31, %v827_v27  ;;  %v1149_v12 = vpop.f32.mrf.mxu0 }
 0x280   :  { %v1109_v14 = vpop.f32.mrf.mxu2 }
 0x281   :  { %v1110_v44 = vadd.f32 %v1109_v14, %v1090_v55  ;;  %v1129_v40 = vpop.f32.mrf.mxu3 }
 0x283   :  { %v1130_v60 = vadd.f32 %v1129_v40, %v1110_v44 }
 0x285   :  { %v1150_v61 = vadd.f32 %v1149_v12, %v1130_v60 }
 0x287   :  { %v1155_v43 = vmax.f32 %v1150_v61, 0.0 }
 0x289   :  { %1364 = vmatmul.f32.vlgmr.msrb.gmra.mxu0 %v1155_v43 }
 0x2c1   :  { %v1305_v41 = vpop.f32.mrf.mxu1 }
 0x2c2   :  { %v1306_v42 = vadd.f32 %v1707_v26, %v1305_v41 }
 0x2d1   :  { %v1325_v38 = vpop.f32.mrf.mxu2 }
 0x2d2   :  { %v1326_v39 = vadd.f32 %v1325_v38, %v1306_v42 }
 0x2eb   :  { %v1345_v28 = vpop.f32.mrf.mxu3 }
 0x2ec   :  { %v1346_v2 = vadd.f32 %v1345_v28, %v1326_v39 }
 0x306   :  { %v1365_v59 = vpop.f32.mrf.mxu0 }
 0x307   :  { %v1366_v6 = vadd.f32 %v1365_v59, %v1346_v2 }
 0x309   :  { %1368 = vst [vmem:[%s2985_s11] sm:$0xff] %v1366_v6 }

</bundles_post_ra>
